<compile_context>
chip_gen: v5e
topology: v5e:2x2
jax: 0.10.0
libtpu: 0.0.40
codegen_flags: <defaults>
</compile_context>

<pallas_src>
import jax
import jax.numpy as jnp
from jax.experimental import pallas as pl
from jax.experimental.pallas import tpu as pltpu


def _round_up(x, n):
    return ((x + n - 1) // n) * n


def _tensorcores_per_chip():
    # v7x has 2 TensorCores per chip; v5e/v6e have 1.  Heuristic only (used to keep the
    # batch grid >= 2 on dual-core chips); harmless if it guesses wrong.
    try:
        kind = jax.devices()[0].device_kind.lower()
        return 2 if "7" in kind else 1
    except Exception:
        return 1


def _make_q_kernel(m):
    """Fused 3-layer MLP (SiLU, SiLU, Identity) in batch-on-lanes (transposed) layout.

    obsT/actT : [obs_dim, TB] / [act_dim, TB]   bf16, batch tile on lanes
    w1o/w1a   : [h1, obs_dim] / [h1, act_dim]   bf16  (PyTorch W1 split by input column)
    w2        : [h2, h1]                        bf16
    w3T       : [h2, m]                         f32
    b*        : [out_f, 1]                      f32
    qT        : [m, TB]                         f32, lane-dense output block
    """

    def kernel(obsT_ref, actT_ref, w1o_ref, w1a_ref, b1_ref,
               w2_ref, b2_ref, w3T_ref, b3_ref, qT_ref):
        # Layer 1: split-K matmul (concat folded into two MXU pushes), bf16 -> f32 acc.
        h = jnp.dot(w1o_ref[...], obsT_ref[...], preferred_element_type=jnp.float32)
        h = h + jnp.dot(w1a_ref[...], actT_ref[...], preferred_element_type=jnp.float32)
        h = h + b1_ref[...]
        h = h * jax.nn.sigmoid(h)                      # SiLU via EUP logistic + VPU mul

        # Layer 2
        h = jnp.dot(w2_ref[...], h.astype(jnp.bfloat16),
                    preferred_element_type=jnp.float32) + b2_ref[...]
        h = h * jax.nn.sigmoid(h)

        # Output head (Identity activation).
        if m == 1:
            # Dense on VPU/XLU: broadcast-multiply + sublane reduce, no 1-row MXU pass.
            q = jnp.sum(w3T_ref[...] * h, axis=0, keepdims=True)
        else:
            q = jax.lax.dot_general(w3T_ref[...], h, (((0,), (0,)), ((), ())),
                                    preferred_element_type=jnp.float32)
        qT_ref[...] = q + b3_ref[...]

    return kernel


def mlp_q_function(obs, act, params, *, tb=None):
    """q = MLP(concat([obs, act], -1)); returns [B, m], matching the PyTorch forward."""
    obs = obs.astype(jnp.float32)
    act = act.astype(jnp.float32)
    B, obs_dim = obs.shape
    act_dim = act.shape[1]
    m = params["w3"].shape[0]

    # ---- batch tile / grid selection -------------------------------------------------
    b128 = _round_up(B, 128)
    if tb is None:
        if _tensorcores_per_chip() >= 2 and b128 >= 256:
            tb = min(512, _round_up(b128 // 2, 128))   # keep >= 2 grid steps for 2 TCs
        else:
            tb = min(512, b128)                        # single step when batch fits
    n_blk = pl.cdiv(b128, tb)
    b_pad = n_blk * tb
    pad = b_pad - B

    # ---- wrapper-side layout plumbing (one fused pad+transpose+cast copy per input) ---
    obsT = jnp.pad(obs, ((0, pad), (0, 0))).T.astype(jnp.bfloat16)   # [obs_dim, b_pad]
    actT = jnp.pad(act, ((0, pad), (0, 0))).T.astype(jnp.bfloat16)   # [act_dim, b_pad]

    # Weights stay in PyTorch [out, in] storage; layer-1 weight split by input column so
    # the kernel never needs the concatenated input.
    w1o = params["w1"][:, :obs_dim].astype(jnp.bfloat16)             # [h1, obs_dim]
    w1a = params["w1"][:, obs_dim:].astype(jnp.bfloat16)             # [h1, act_dim]
    b1 = params["b1"].astype(jnp.float32)                            # [h1, 1]
    w2 = params["w2"].astype(jnp.bfloat16)                           # [h2, h1]
    b2 = params["b2"].astype(jnp.float32)                            # [h2, 1]
    w3T = params["w3"].T.astype(jnp.float32)                         # [h2, m]
    b3 = params["b3"].astype(jnp.float32)                            # [m, 1]

    kernel = _make_q_kernel(m)
    args = (obsT, actT, w1o, w1a, b1, w2, b2, w3T, b3)

    def build(single_buffer_residents):
        def resident(shape):
            kwargs = {}
            if single_buffer_residents:
                kwargs["pipeline_mode"] = pl.Buffered(1)   # no revolving-buffer bookkeeping
            return pl.BlockSpec(shape, lambda i: (0,) * len(shape), **kwargs)

        return pl.pallas_call(
            kernel,
            out_shape=jax.ShapeDtypeStruct((m, b_pad), jnp.float32),
            grid=(n_blk,),
            in_specs=[
                pl.BlockSpec((obs_dim, tb), lambda i: (0, i)),   # streamed batch tiles
                pl.BlockSpec((act_dim, tb), lambda i: (0, i)),
                resident(w1o.shape), resident(w1a.shape), resident(b1.shape),
                resident(w2.shape), resident(b2.shape),
                resident(w3T.shape), resident(b3.shape),
            ],
            out_specs=pl.BlockSpec((m, tb), lambda i: (0, i)),   # lane-dense q^T block
            compiler_params=pltpu.CompilerParams(
                dimension_semantics=("parallel",),               # batch tiles independent
                vmem_limit_bytes=32 * 1024 * 1024,               # fits v5e/v6e/v7x budgets
            ),
        )

    try:
        qT = build(single_buffer_residents=True)(*args)
    except Exception:
        # Fallback if this JAX build rejects Buffered(1) for pallas_call block specs.
        qT = build(single_buffer_residents=False)(*args)

    return qT[:, :B].T    # back to the module's [B, m] output (drop batch padding)


def init_params(key, obs_dim, act_dim, hidden_sizes, m=1):
    """Deterministic synthetic parameters; weights in PyTorch [out, in] layout."""
    sizes = [obs_dim + act_dim] + list(hidden_sizes) + [m]
    keys = jax.random.split(key, 2 * (len(sizes) - 1))
    p = {}
    for j in range(len(sizes) - 1):
        fan_in, fan_out = sizes[j], sizes[j + 1]
        p[f"w{j + 1}"] = jax.random.normal(keys[2 * j], (fan_out, fan_in), jnp.float32) * 0.1
        p[f"b{j + 1}"] = jax.random.normal(keys[2 * j + 1], (fan_out, 1), jnp.float32) * 0.1
    return p


def _reference(obs, act, p):
    """Pure-JAX f32 reference mirroring the PyTorch forward."""
    x = jnp.concatenate([obs, act], axis=-1)
    silu = lambda z: z * jax.nn.sigmoid(z)
    h = silu(x @ p["w1"].T + p["b1"][:, 0])
    h = silu(h @ p["w2"].T + p["b2"][:, 0])
    return h @ p["w3"].T + p["b3"][:, 0]


if __name__ == "__main__":
    obs_dim, act_dim, m = 16, 8, 1
    hidden_sizes = (64, 64)
    batch = 200   # not a multiple of 128: exercises the batch-padding / slice-back path

    key = jax.random.PRNGKey(0)
    k_obs, k_act, k_param = jax.random.split(key, 3)

    obs = jax.random.normal(k_obs, (batch, obs_dim), jnp.float32)
    act = jax.random.normal(k_act, (batch, act_dim), jnp.float32)
    params = init_params(k_param, obs_dim, act_dim, hidden_sizes, m)

    q = mlp_q_function(obs, act, params)
    jax.block_until_ready(q)

    q_ref = _reference(obs, act, params)
    assert q.shape == (batch, m), q.shape
    # bf16 MXU operands vs. f32 reference: expect ~1e-2 absolute deviation at this scale.
    max_err = float(jnp.max(jnp.abs(q - q_ref)))
    assert max_err < 5e-2, max_err

    print("KERNEL_OK")
</pallas_src>

<mosaic_0001>
module attributes {stable_mosaic.version = 11 : i64} {
  func.func @kernel(%arg0: i32, %arg1: memref<16x256xbf16, #tpu.memory_space<vmem>>, %arg2: memref<8x256xbf16, #tpu.memory_space<vmem>>, %arg3: memref<64x16xbf16, #tpu.memory_space<vmem>>, %arg4: memref<64x8xbf16, #tpu.memory_space<vmem>>, %arg5: memref<64x1xf32, #tpu.memory_space<vmem>>, %arg6: memref<64x64xbf16, #tpu.memory_space<vmem>>, %arg7: memref<64x1xf32, #tpu.memory_space<vmem>>, %arg8: memref<64x1xf32, #tpu.memory_space<vmem>>, %arg9: memref<1x1xf32, #tpu.memory_space<vmem>>, %arg10: memref<1x256xf32, #tpu.memory_space<vmem>>) attributes {dimension_semantics = [#tpu.dimension_semantics<parallel>], iteration_bounds = array<i64: 1>, scalar_prefetch = 0 : i64, scratch_operands = 0 : i64, tpu.core_type = #tpu.core_type<tc>, window_params = [{transform_indices = @transform_0, window_bounds = array<i64: 16, 256>}, {transform_indices = @transform_1, window_bounds = array<i64: 8, 256>}, {pipeline_mode = #tpu.pipeline_mode<synchronous>, transform_indices = @transform_2, window_bounds = array<i64: 64, 16>}, {pipeline_mode = #tpu.pipeline_mode<synchronous>, transform_indices = @transform_3, window_bounds = array<i64: 64, 8>}, {pipeline_mode = #tpu.pipeline_mode<synchronous>, transform_indices = @transform_4, window_bounds = array<i64: 64, 1>}, {pipeline_mode = #tpu.pipeline_mode<synchronous>, transform_indices = @transform_5, window_bounds = array<i64: 64, 64>}, {pipeline_mode = #tpu.pipeline_mode<synchronous>, transform_indices = @transform_6, window_bounds = array<i64: 64, 1>}, {pipeline_mode = #tpu.pipeline_mode<synchronous>, transform_indices = @transform_7, window_bounds = array<i64: 64, 1>}, {pipeline_mode = #tpu.pipeline_mode<synchronous>, transform_indices = @transform_8, window_bounds = array<i64: 1, 1>}, {transform_indices = @transform_9, window_bounds = array<i64: 1, 256>}]} {
    %c0 = arith.constant 0 : index
    %c0_0 = arith.constant 0 : index
    %0 = vector.load %arg3[%c0, %c0_0] : memref<64x16xbf16, #tpu.memory_space<vmem>>, vector<64x16xbf16>
    %c0_1 = arith.constant 0 : index
    %c0_2 = arith.constant 0 : index
    %1 = vector.load %arg1[%c0_1, %c0_2] : memref<16x256xbf16, #tpu.memory_space<vmem>>, vector<16x256xbf16>
    %cst = arith.constant dense<0.000000e+00> : vector<64x256xf32>
    %2 = tpu.matmul %0, %1, %cst {dimension_numbers = #tpu.dot_dimension_numbers<[1], [0], [0], [1], [0, 0, 1, 1], [], []>} : vector<64x16xbf16>, vector<16x256xbf16>, vector<64x256xf32> -> vector<64x256xf32>
    %c0_3 = arith.constant 0 : index
    %c0_4 = arith.constant 0 : index
    %3 = vector.load %arg4[%c0_3, %c0_4] : memref<64x8xbf16, #tpu.memory_space<vmem>>, vector<64x8xbf16>
    %c0_5 = arith.constant 0 : index
    %c0_6 = arith.constant 0 : index
    %4 = vector.load %arg2[%c0_5, %c0_6] : memref<8x256xbf16, #tpu.memory_space<vmem>>, vector<8x256xbf16>
    %cst_7 = arith.constant dense<0.000000e+00> : vector<64x256xf32>
    %5 = tpu.matmul %3, %4, %cst_7 {dimension_numbers = #tpu.dot_dimension_numbers<[1], [0], [0], [1], [0, 0, 1, 1], [], []>} : vector<64x8xbf16>, vector<8x256xbf16>, vector<64x256xf32> -> vector<64x256xf32>
    %6 = arith.addf %2, %5 : vector<64x256xf32>
    %c0_8 = arith.constant 0 : index
    %c0_9 = arith.constant 0 : index
    %7 = vector.load %arg5[%c0_8, %c0_9] : memref<64x1xf32, #tpu.memory_space<vmem>>, vector<64x1xf32>
    %8 = vector.broadcast %7 : vector<64x1xf32> to vector<64x256xf32>
    %9 = arith.addf %6, %8 : vector<64x256xf32>
    %10 = arith.negf %9 : vector<64x256xf32>
    %11 = math.exp %10 : vector<64x256xf32>
    %cst_10 = arith.constant 1.000000e+00 : f32
    %12 = vector.broadcast %cst_10 : f32 to vector<64x256xf32>
    %13 = arith.addf %12, %11 : vector<64x256xf32>
    %14 = arith.divf %12, %13 : vector<64x256xf32>
    %15 = arith.mulf %9, %14 : vector<64x256xf32>
    %c0_11 = arith.constant 0 : index
    %c0_12 = arith.constant 0 : index
    %16 = vector.load %arg6[%c0_11, %c0_12] : memref<64x64xbf16, #tpu.memory_space<vmem>>, vector<64x64xbf16>
    %17 = arith.truncf %15 : vector<64x256xf32> to vector<64x256xbf16>
    %cst_13 = arith.constant dense<0.000000e+00> : vector<64x256xf32>
    %18 = tpu.matmul %16, %17, %cst_13 {dimension_numbers = #tpu.dot_dimension_numbers<[1], [0], [0], [1], [0, 0, 1, 1], [], []>} : vector<64x64xbf16>, vector<64x256xbf16>, vector<64x256xf32> -> vector<64x256xf32>
    %c0_14 = arith.constant 0 : index
    %c0_15 = arith.constant 0 : index
    %19 = vector.load %arg7[%c0_14, %c0_15] : memref<64x1xf32, #tpu.memory_space<vmem>>, vector<64x1xf32>
    %20 = vector.broadcast %19 : vector<64x1xf32> to vector<64x256xf32>
    %21 = arith.addf %18, %20 : vector<64x256xf32>
    %22 = arith.negf %21 : vector<64x256xf32>
    %23 = math.exp %22 : vector<64x256xf32>
    %cst_16 = arith.constant 1.000000e+00 : f32
    %24 = vector.broadcast %cst_16 : f32 to vector<64x256xf32>
    %25 = arith.addf %24, %23 : vector<64x256xf32>
    %26 = arith.divf %24, %25 : vector<64x256xf32>
    %27 = arith.mulf %21, %26 : vector<64x256xf32>
    %c0_17 = arith.constant 0 : index
    %c0_18 = arith.constant 0 : index
    %28 = vector.load %arg8[%c0_17, %c0_18] : memref<64x1xf32, #tpu.memory_space<vmem>>, vector<64x1xf32>
    %29 = vector.broadcast %28 : vector<64x1xf32> to vector<64x256xf32>
    %30 = arith.mulf %29, %27 : vector<64x256xf32>
    %cst_19 = arith.constant dense<0.000000e+00> : vector<256xf32>
    %31 = vector.multi_reduction <add>, %30, %cst_19 [0] : vector<64x256xf32> to vector<256xf32>
    %32 = vector.shape_cast %31 : vector<256xf32> to vector<1x256xf32>
    %c0_20 = arith.constant 0 : index
    %c0_21 = arith.constant 0 : index
    %33 = vector.load %arg9[%c0_20, %c0_21] : memref<1x1xf32, #tpu.memory_space<vmem>>, vector<1x1xf32>
    %34 = vector.broadcast %33 : vector<1x1xf32> to vector<1x256xf32>
    %35 = arith.addf %32, %34 : vector<1x256xf32>
    %c0_22 = arith.constant 0 : index
    %c0_23 = arith.constant 0 : index
    %36 = vector.load %arg10[%c0_22, %c0_23] : memref<1x256xf32, #tpu.memory_space<vmem>>, vector<1x256xf32>
    tpu.vector_store %arg10[%c0_22, %c0_23], %35 {strides = array<i32>} : memref<1x256xf32, #tpu.memory_space<vmem>>, vector<1x256xf32>,
    return
  }
  func.func @transform_0(%arg0: i32) -> (i32, i32) {
    %c0_i32 = arith.constant 0 : i32
    %c0_i32_0 = arith.constant 0 : i32
    return %c0_i32, %arg0 : i32, i32
  }
  func.func @transform_1(%arg0: i32) -> (i32, i32) {
    %c0_i32 = arith.constant 0 : i32
    %c0_i32_0 = arith.constant 0 : i32
    return %c0_i32, %arg0 : i32, i32
  }
  func.func @transform_2(%arg0: i32) -> (i32, i32) {
    %c0_i32 = arith.constant 0 : i32
    %c0_i32_0 = arith.constant 0 : i32
    %c0_i32_1 = arith.constant 0 : i32
    return %c0_i32, %c0_i32_0 : i32, i32
  }
  func.func @transform_3(%arg0: i32) -> (i32, i32) {
    %c0_i32 = arith.constant 0 : i32
    %c0_i32_0 = arith.constant 0 : i32
    %c0_i32_1 = arith.constant 0 : i32
    return %c0_i32, %c0_i32_0 : i32, i32
  }
  func.func @transform_4(%arg0: i32) -> (i32, i32) {
    %c0_i32 = arith.constant 0 : i32
    %c0_i32_0 = arith.constant 0 : i32
    %c0_i32_1 = arith.constant 0 : i32
    return %c0_i32, %c0_i32_0 : i32, i32
  }
  func.func @transform_5(%arg0: i32) -> (i32, i32) {
    %c0_i32 = arith.constant 0 : i32
    %c0_i32_0 = arith.constant 0 : i32
    %c0_i32_1 = arith.constant 0 : i32
    return %c0_i32, %c0_i32_0 : i32, i32
  }
  func.func @transform_6(%arg0: i32) -> (i32, i32) {
    %c0_i32 = arith.constant 0 : i32
    %c0_i32_0 = arith.constant 0 : i32
    %c0_i32_1 = arith.constant 0 : i32
    return %c0_i32, %c0_i32_0 : i32, i32
  }
  func.func @transform_7(%arg0: i32) -> (i32, i32) {
    %c0_i32 = arith.constant 0 : i32
    %c0_i32_0 = arith.constant 0 : i32
    %c0_i32_1 = arith.constant 0 : i32
    return %c0_i32, %c0_i32_0 : i32, i32
  }
  func.func @transform_8(%arg0: i32) -> (i32, i32) {
    %c0_i32 = arith.constant 0 : i32
    %c0_i32_0 = arith.constant 0 : i32
    %c0_i32_1 = arith.constant 0 : i32
    return %c0_i32, %c0_i32_0 : i32, i32
  }
  func.func @transform_9(%arg0: i32) -> (i32, i32) {
    %c0_i32 = arith.constant 0 : i32
    %c0_i32_0 = arith.constant 0 : i32
    return %c0_i32, %arg0 : i32, i32
  }
}

module attributes {stable_mosaic.version = 11 : i64} {
  func.func @kernel(%arg0: i32, %arg1: memref<16x256xbf16, #tpu.memory_space<vmem>>, %arg2: memref<8x256xbf16, #tpu.memory_space<vmem>>, %arg3: memref<64x16xbf16, #tpu.memory_space<vmem>>, %arg4: memref<64x8xbf16, #tpu.memory_space<vmem>>, %arg5: memref<64x1xf32, #tpu.memory_space<vmem>>, %arg6: memref<64x64xbf16, #tpu.memory_space<vmem>>, %arg7: memref<64x1xf32, #tpu.memory_space<vmem>>, %arg8: memref<64x1xf32, #tpu.memory_space<vmem>>, %arg9: memref<1x1xf32, #tpu.memory_space<vmem>>, %arg10: memref<1x256xf32, #tpu.memory_space<vmem>>) attributes {dimension_semantics = [#tpu.dimension_semantics<parallel>], iteration_bounds = array<i64: 1>, scalar_prefetch = 0 : i64, scratch_operands = 0 : i64, tpu.core_type = #tpu.core_type<tc>, window_params = [{transform_indices = @transform_0, window_bounds = array<i64: 16, 256>}, {transform_indices = @transform_1, window_bounds = array<i64: 8, 256>}, {pipeline_mode = #tpu.pipeline_mode<synchronous>, transform_indices = @transform_2, window_bounds = array<i64: 64, 16>}, {pipeline_mode = #tpu.pipeline_mode<synchronous>, transform_indices = @transform_3, window_bounds = array<i64: 64, 8>}, {pipeline_mode = #tpu.pipeline_mode<synchronous>, transform_indices = @transform_4, window_bounds = array<i64: 64, 1>}, {pipeline_mode = #tpu.pipeline_mode<synchronous>, transform_indices = @transform_5, window_bounds = array<i64: 64, 64>}, {pipeline_mode = #tpu.pipeline_mode<synchronous>, transform_indices = @transform_6, window_bounds = array<i64: 64, 1>}, {pipeline_mode = #tpu.pipeline_mode<synchronous>, transform_indices = @transform_7, window_bounds = array<i64: 64, 1>}, {pipeline_mode = #tpu.pipeline_mode<synchronous>, transform_indices = @transform_8, window_bounds = array<i64: 1, 1>}, {transform_indices = @transform_9, window_bounds = array<i64: 1, 256>}]} {
    %c0 = arith.constant 0 : index
    %c0_0 = arith.constant 0 : index
    %0 = vector.load %arg3[%c0, %c0_0] : memref<64x16xbf16, #tpu.memory_space<vmem>>, vector<64x16xbf16>
    %c0_1 = arith.constant 0 : index
    %c0_2 = arith.constant 0 : index
    %1 = vector.load %arg1[%c0_1, %c0_2] : memref<16x256xbf16, #tpu.memory_space<vmem>>, vector<16x256xbf16>
    %cst = arith.constant dense<0.000000e+00> : vector<64x256xf32>
    %2 = tpu.matmul %0, %1, %cst {dimension_numbers = #tpu.dot_dimension_numbers<[1], [0], [0], [1], [0, 0, 1, 1], [], []>} : vector<64x16xbf16>, vector<16x256xbf16>, vector<64x256xf32> -> vector<64x256xf32>
    %c0_3 = arith.constant 0 : index
    %c0_4 = arith.constant 0 : index
    %3 = vector.load %arg4[%c0_3, %c0_4] : memref<64x8xbf16, #tpu.memory_space<vmem>>, vector<64x8xbf16>
    %c0_5 = arith.constant 0 : index
    %c0_6 = arith.constant 0 : index
    %4 = vector.load %arg2[%c0_5, %c0_6] : memref<8x256xbf16, #tpu.memory_space<vmem>>, vector<8x256xbf16>
    %cst_7 = arith.constant dense<0.000000e+00> : vector<64x256xf32>
    %5 = tpu.matmul %3, %4, %cst_7 {dimension_numbers = #tpu.dot_dimension_numbers<[1], [0], [0], [1], [0, 0, 1, 1], [], []>} : vector<64x8xbf16>, vector<8x256xbf16>, vector<64x256xf32> -> vector<64x256xf32>
    %6 = arith.addf %2, %5 : vector<64x256xf32>
    %c0_8 = arith.constant 0 : index
    %c0_9 = arith.constant 0 : index
    %7 = vector.load %arg5[%c0_8, %c0_9] : memref<64x1xf32, #tpu.memory_space<vmem>>, vector<64x1xf32>
    %8 = vector.broadcast %7 : vector<64x1xf32> to vector<64x256xf32>
    %9 = arith.addf %6, %8 : vector<64x256xf32>
    %10 = arith.negf %9 : vector<64x256xf32>
    %11 = math.exp %10 : vector<64x256xf32>
    %cst_10 = arith.constant 1.000000e+00 : f32
    %12 = vector.broadcast %cst_10 : f32 to vector<64x256xf32>
    %13 = arith.addf %12, %11 : vector<64x256xf32>
    %14 = arith.divf %12, %13 : vector<64x256xf32>
    %15 = arith.mulf %9, %14 : vector<64x256xf32>
    %c0_11 = arith.constant 0 : index
    %c0_12 = arith.constant 0 : index
    %16 = vector.load %arg6[%c0_11, %c0_12] : memref<64x64xbf16, #tpu.memory_space<vmem>>, vector<64x64xbf16>
    %17 = arith.truncf %15 : vector<64x256xf32> to vector<64x256xbf16>
    %cst_13 = arith.constant dense<0.000000e+00> : vector<64x256xf32>
    %18 = tpu.matmul %16, %17, %cst_13 {dimension_numbers = #tpu.dot_dimension_numbers<[1], [0], [0], [1], [0, 0, 1, 1], [], []>} : vector<64x64xbf16>, vector<64x256xbf16>, vector<64x256xf32> -> vector<64x256xf32>
    %c0_14 = arith.constant 0 : index
    %c0_15 = arith.constant 0 : index
    %19 = vector.load %arg7[%c0_14, %c0_15] : memref<64x1xf32, #tpu.memory_space<vmem>>, vector<64x1xf32>
    %20 = vector.broadcast %19 : vector<64x1xf32> to vector<64x256xf32>
    %21 = arith.addf %18, %20 : vector<64x256xf32>
    %22 = arith.negf %21 : vector<64x256xf32>
    %23 = math.exp %22 : vector<64x256xf32>
    %cst_16 = arith.constant 1.000000e+00 : f32
    %24 = vector.broadcast %cst_16 : f32 to vector<64x256xf32>
    %25 = arith.addf %24, %23 : vector<64x256xf32>
    %26 = arith.divf %24, %25 : vector<64x256xf32>
    %27 = arith.mulf %21, %26 : vector<64x256xf32>
    %c0_17 = arith.constant 0 : index
    %c0_18 = arith.constant 0 : index
    %28 = vector.load %arg8[%c0_17, %c0_18] : memref<64x1xf32, #tpu.memory_space<vmem>>, vector<64x1xf32>
    %29 = vector.broadcast %28 : vector<64x1xf32> to vector<64x256xf32>
    %30 = arith.mulf %29, %27 : vector<64x256xf32>
    %cst_19 = arith.constant dense<0.000000e+00> : vector<256xf32>
    %31 = vector.multi_reduction <add>, %30, %cst_19 [0] : vector<64x256xf32> to vector<256xf32>
    %32 = vector.shape_cast %31 : vector<256xf32> to vector<1x256xf32>
    %c0_20 = arith.constant 0 : index
    %c0_21 = arith.constant 0 : index
    %33 = vector.load %arg9[%c0_20, %c0_21] : memref<1x1xf32, #tpu.memory_space<vmem>>, vector<1x1xf32>
    %34 = vector.broadcast %33 : vector<1x1xf32> to vector<1x256xf32>
    %35 = arith.addf %32, %34 : vector<1x256xf32>
    %c0_22 = arith.constant 0 : index
    %c0_23 = arith.constant 0 : index
    %36 = vector.load %arg10[%c0_22, %c0_23] : memref<1x256xf32, #tpu.memory_space<vmem>>, vector<1x256xf32>
    tpu.vector_store %arg10[%c0_22, %c0_23], %35 {strides = array<i32>} : memref<1x256xf32, #tpu.memory_space<vmem>>, vector<1x256xf32>,
    return
  }
  func.func @transform_0(%arg0: i32) -> (i32, i32) {
    %c0_i32 = arith.constant 0 : i32
    %c0_i32_0 = arith.constant 0 : i32
    return %c0_i32, %arg0 : i32, i32
  }
  func.func @transform_1(%arg0: i32) -> (i32, i32) {
    %c0_i32 = arith.constant 0 : i32
    %c0_i32_0 = arith.constant 0 : i32
    return %c0_i32, %arg0 : i32, i32
  }
  func.func @transform_2(%arg0: i32) -> (i32, i32) {
    %c0_i32 = arith.constant 0 : i32
    %c0_i32_0 = arith.constant 0 : i32
    %c0_i32_1 = arith.constant 0 : i32
    return %c0_i32, %c0_i32_0 : i32, i32
  }
  func.func @transform_3(%arg0: i32) -> (i32, i32) {
    %c0_i32 = arith.constant 0 : i32
    %c0_i32_0 = arith.constant 0 : i32
    %c0_i32_1 = arith.constant 0 : i32
    return %c0_i32, %c0_i32_0 : i32, i32
  }
  func.func @transform_4(%arg0: i32) -> (i32, i32) {
    %c0_i32 = arith.constant 0 : i32
    %c0_i32_0 = arith.constant 0 : i32
    %c0_i32_1 = arith.constant 0 : i32
    return %c0_i32, %c0_i32_0 : i32, i32
  }
  func.func @transform_5(%arg0: i32) -> (i32, i32) {
    %c0_i32 = arith.constant 0 : i32
    %c0_i32_0 = arith.constant 0 : i32
    %c0_i32_1 = arith.constant 0 : i32
    return %c0_i32, %c0_i32_0 : i32, i32
  }
  func.func @transform_6(%arg0: i32) -> (i32, i32) {
    %c0_i32 = arith.constant 0 : i32
    %c0_i32_0 = arith.constant 0 : i32
    %c0_i32_1 = arith.constant 0 : i32
    return %c0_i32, %c0_i32_0 : i32, i32
  }
  func.func @transform_7(%arg0: i32) -> (i32, i32) {
    %c0_i32 = arith.constant 0 : i32
    %c0_i32_0 = arith.constant 0 : i32
    %c0_i32_1 = arith.constant 0 : i32
    return %c0_i32, %c0_i32_0 : i32, i32
  }
  func.func @transform_8(%arg0: i32) -> (i32, i32) {
    %c0_i32 = arith.constant 0 : i32
    %c0_i32_0 = arith.constant 0 : i32
    %c0_i32_1 = arith.constant 0 : i32
    return %c0_i32, %c0_i32_0 : i32, i32
  }
  func.func @transform_9(%arg0: i32) -> (i32, i32) {
    %c0_i32 = arith.constant 0 : i32
    %c0_i32_0 = arith.constant 0 : i32
    return %c0_i32, %arg0 : i32, i32
  }
}

</mosaic_0001>

<bundles_post_ra>
// kernel: tpu_custom_call.1
= control target key start
LH: loop header
LB: loop body
LE: loop exit
PB: predicated region body
PF: predicated region fallthrough
CT: control target
= control target key end

     0   :  { %s2752_s0 = inlined_call_operand.vmem [shape: bf16[16,256], index: 0, kind: input, shape index: {}]   ;;  %s2753_s1 = inlined_call_operand.vmem [shape: bf16[8,256], index: 1, kind: input, shape index: {}]   ;;  %s2754_s2 = inlined_call_operand.vmem [shape: bf16[64,16], index: 2, kind: input, shape index: {}]   ;;  %s2755_s3 = inlined_call_operand.vmem [shape: bf16[64,8], index: 3, kind: input, shape index: {}]   ;;  %s2756_s4 = inlined_call_operand.vmem [shape: f32[64,1], index: 4, kind: input, shape index: {}]   ;;  %s2757_s5 = inlined_call_operand.vmem [shape: bf16[64,64], index: 5, kind: input, shape index: {}]   ;;  %s2758_s6 = inlined_call_operand.vmem [shape: f32[64,1], index: 6, kind: input, shape index: {}]   ;;  %s2759_s7 = inlined_call_operand.vmem [shape: f32[64,1], index: 7, kind: input, shape index: {}]   ;;  %s2760_s8 = inlined_call_operand.<no memory space> [shape: f32[1,1], index: 8, kind: input, shape index: {}]   ;;  %s2761_s9 = inlined_call_operand.hbm [shape: f32[1,256], index: 9, kind: output, shape index: {}]  }
   0x1   :  { %v14_v0 = vstv %s2760_s8 }
   0x2   :  { %15 = vst [vmem:[#allocation2] sm:$0x1] %v14_v0 }
   0x3   :  { %v54_v1 = vld [vmem:[%s2753_s1] sm:$0xff]  ;;  %v1288_v5 = vld [vmem:[%s2752_s0 + $0x8] sm:$0xf0]  ;;  %vm93_vm0 = vcmask 1043456   ;;  %v1361_v7 = vld [vmem:[%s2752_s0 + $0x4] sm:$0xf0] }
   0x4   :  { %v76_v2 = vunpack.c.l.b16 %v54_v1  ;;  %v77_v3 = vunpack.c.h.b16 %v54_v1  ;;  %v1360_v4 = vld [vmem:[%s2752_s0 + $0x4] sm:$0xf]  ;;  %v1286_v6 = vld [vmem:[%s2752_s0] sm:$0xf] }
   0x5   :  { %16 = vsyncpa [#allocation4], 0  ;;  %v1291_v10 = vor.u32 %v1360_v4, %v1288_v5  ;;  %v1287_v11 = vor.u32 %v1361_v7, %v1286_v6  ;;  %v1364_v14 = vld [vmem:[%s2755_s3 + $0x10] sm:$0xff]  ;;  %vm80_vm1 = vcmask 64512   ;;  %v1362_v16 = vld [vmem:[%s2755_s3] sm:$0xff]  ;;  %v1531_v17 = vmov 0  }
   0x6   :  { %v78_v8 = vpack.c.b16 %v76_v2, %v76_v2  ;;  %v79_v9 = vpack.c.b16 %v77_v3, %v77_v3  ;;  %v265_v15 = vld [vmem:[%s2756_s4 + $0x30] sm:$0xff]  ;;  %1374 = vset.pattern.permute.xlu0 %v1531_v17  ;;  %1375 = vset.pattern.permute.xlu1 %v1531_v17  ;;  %v263_v18 = vld [vmem:[%s2756_s4 + $0x20] sm:$0xff]  ;;  %v266_v19 = vld [vmem:[%s2756_s4 + $0x38] sm:$0xff]  ;;  %vm188_vm2 = vcmask 130048   ;;  %s1235_s18 = sshll.u32 %s2761_s9, 4  ;;  %s1236_s18 = int_to_ptr.hbm [resolvable:$true] %s1235_s18 }
   0x7   :  { %299 = vperm.xlu0 %1374, %v265_v15   ;;  %289 = vperm.xlu1 %1375, %v263_v18   ;;  %v1365_v20 = vld [vmem:[%s2755_s3 + $0x18] sm:$0xff]  ;;  %v264_v21 = vld [vmem:[%s2756_s4 + $0x28] sm:$0xff]  ;;  %v259_v22 = vld [vmem:[%s2756_s4] sm:$0xff] }
   0x8   :  { %v95_v12 = vsel %vm93_vm0, %v78_v8, 0  ;;  %v98_v13 = vsel %vm93_vm0, %v79_v9, 0  ;;  %1376 = vset.pattern.permute.xlu2 %v1531_v17  ;;  %v1363_v23 = vld [vmem:[%s2755_s3 + $0x8] sm:$0xff]  ;;  %v1356_v26 = vld [vmem:[%s2754_s2] sm:$0xff]  ;;  %v661_v28 = vld [vmem:[%s2758_s6 + $0x10] sm:$0xff] }
   0x9   :  { %1370 = vmatpush.bf16.msra.mxu2 %v95_v12  ;;  %1371 = vmatpush.bf16.msra.mxu3 %v98_v13  ;;  %v260_v24 = vld [vmem:[%s2756_s4 + $0x8] sm:$0xff]  ;;  %v663_v27 = vld [vmem:[%s2758_s6 + $0x20] sm:$0xff]  ;;  %v666_v29 = vld [vmem:[%s2758_s6 + $0x38] sm:$0xff] }
   0xa   :  { %107 = vmatpush.bf16.msra.mxu0 %v95_v12  ;;  %136 = vmatpush.bf16.msra.mxu1 %v98_v13  ;;  %v660_v25 = vld [vmem:[%s2758_s6 + $0x8] sm:$0xff]  ;;  %v261_v30 = vld [vmem:[%s2756_s4 + $0x10] sm:$0xff]  ;;  %v262_v34 = vld [vmem:[%s2756_s4 + $0x18] sm:$0xff] }
   0xb   :  { %279 = vperm.xlu2 %1376, %v261_v30   ;;  %v1357_v31 = vld [vmem:[%s2754_s2 + $0x8] sm:$0xff]  ;;  %v1120_v33 = vld [vmem:[%s2759_s7 + $0x10] sm:$0xff]  ;;  %v1118_v35 = vld [vmem:[%s2759_s7] sm:$0xff] }
   0xc   :  { %1262 = vmatmul.msk.bf16.vlgmr.msra.gmra.mxu2 %vm80_vm1, %v1364_v14  ;;  %1266 = vmatmul.msk.bf16.vlgmr.msra.gmra.mxu3 %vm80_vm1, %v1364_v14  ;;  %v664_v32 = vld [vmem:[%s2758_s6 + $0x28] sm:$0xff]  ;;  %v659_v37 = vld [vmem:[%s2758_s6] sm:$0xff]  ;;  %v1358_v38 = vld [vmem:[%s2754_s2 + $0x10] sm:$0xff] }
   0xd   :  { %237 = vmatpush.bf16.msrb.mxu3 %v1291_v10  ;;  %208 = vmatpush.bf16.msrb.mxu2 %v1287_v11  ;;  %v1123_v36 = vld [vmem:[%s2759_s7 + $0x28] sm:$0xff]  ;;  %v1121_v39 = vld [vmem:[%s2759_s7 + $0x18] sm:$0xff]  ;;  %v1208_v40 = vld [vmem:[#allocation2] sm:$0x1] }
   0xe   :  { %1260 = vmatmul.msk.bf16.vlgmr.msra.gmra.mxu0 %vm80_vm1, %v1362_v16  ;;  %1264 = vmatmul.msk.bf16.vlgmr.msra.gmra.mxu1 %vm80_vm1, %v1362_v16  ;;  %v662_v41 = vld [vmem:[%s2758_s6 + $0x18] sm:$0xff]  ;;  %v1124_v42 = vld [vmem:[%s2759_s7 + $0x30] sm:$0xff]  ;;  %v1119_v45 = vld [vmem:[%s2759_s7 + $0x8] sm:$0xff] }
   0xf   :  { %304 = vperm.xlu0 %1374, %v266_v19   ;;  %294 = vperm.xlu1 %1375, %v264_v21   ;;  %v665_v43 = vld [vmem:[%s2758_s6 + $0x30] sm:$0xff]  ;;  %v1359_v44 = vld [vmem:[%s2754_s2 + $0x18] sm:$0xff]  ;;  %v1122_v46 = vld [vmem:[%s2759_s7 + $0x20] sm:$0xff] }
  0x10   :  { %v1125_v47 = vld [vmem:[%s2759_s7 + $0x38] sm:$0xff] }
  0x13   :  { %284 = vperm.xlu2 %1376, %v262_v34  }
  0x17   :  { %269 = vperm.xlu0 %1374, %v259_v22   ;;  %274 = vperm.xlu1 %1375, %v260_v24  }
  0x1b   :  { %669 = vperm.xlu2 %1376, %v659_v37  }
  0x1c   :  { %1263 = vmatmul.msk.bf16.gmra.mxu2 %vm80_vm1, %v1365_v20  ;;  %1267 = vmatmul.msk.bf16.gmra.mxu3 %vm80_vm1, %v1365_v20 }
  0x1e   :  { %1261 = vmatmul.msk.bf16.gmra.mxu0 %vm80_vm1, %v1363_v23  ;;  %1265 = vmatmul.msk.bf16.gmra.mxu1 %vm80_vm1, %v1363_v23 }
  0x1f   :  { %674 = vperm.xlu0 %1374, %v660_v25   ;;  %679 = vperm.xlu1 %1375, %v661_v28  }
  0x23   :  { %684 = vperm.xlu2 %1376, %v662_v41  }
  0x27   :  { %689 = vperm.xlu0 %1374, %v663_v27   ;;  %694 = vperm.xlu1 %1375, %v664_v32  }
  0x2b   :  { %699 = vperm.xlu2 %1376, %v665_v43  }
  0x2c   :  { %1292 = vmatmul.msk.bf16.vlgmr.msrb.gmra.mxu2 %vm188_vm2, %v1356_v26  ;;  %1296 = vmatmul.msk.bf16.vlgmr.msrb.gmra.mxu3 %vm188_vm2, %v1356_v26 }
  0x2f   :  { %704 = vperm.xlu0 %1374, %v666_v29   ;;  %1128 = vperm.xlu1 %1375, %v1118_v35  }
  0x33   :  { %1133 = vperm.xlu2 %1376, %v1119_v45  }
  0x37   :  { %1138 = vperm.xlu0 %1374, %v1120_v33   ;;  %1143 = vperm.xlu1 %1375, %v1121_v39  }
  0x3b   :  { %1148 = vperm.xlu2 %1376, %v1122_v46  }
  0x3c   :  { %1293 = vmatmul.msk.bf16.gmra.mxu2 %vm188_vm2, %v1357_v31  ;;  %1297 = vmatmul.msk.bf16.gmra.mxu3 %vm188_vm2, %v1357_v31 }
  0x3f   :  { %1153 = vperm.xlu0 %1374, %v1123_v36   ;;  %1158 = vperm.xlu1 %1375, %v1124_v42  }
  0x43   :  { %1163 = vperm.xlu2 %1376, %v1125_v47  }
  0x47   :  { %1211 = vperm.xlu0 %1374, %v1208_v40  }
  0x4c   :  { %1294 = vmatmul.msk.bf16.gmra.mxu2 %vm188_vm2, %v1358_v38  ;;  %1298 = vmatmul.msk.bf16.gmra.mxu3 %vm188_vm2, %v1358_v38 }
  0x5c   :  { %1295 = vmatmul.msk.bf16.gmra.mxu2 %vm188_vm2, %v1359_v44  ;;  %1299 = vmatmul.msk.bf16.gmra.mxu3 %vm188_vm2, %v1359_v44 }
  0x65   :  { %v280_v9 = vpop.permute.xlu2 %279 }
  0x6d   :  { %v285_v33 = vpop.permute.xlu2 %284 }
  0x79   :  { %v1725_v54 = vpop.permute.xlu0 %299  ;;  %v1731_v59 = vpop.permute.xlu1 %289 }
  0x81   :  { %v1733_v62 = vpop.permute.xlu0 %304  ;;  %v1735_v3 = vpop.permute.xlu1 %294 }
  0x89   :  { %v270_v5 = vpop.permute.xlu0 %269  ;;  %v275_v18 = vpop.permute.xlu1 %274 }
  0x8b   :  { %v109_v55 = vpop.f32.mrf.mxu0  ;;  %v138_v58 = vpop.f32.mrf.mxu1 }
  0x8f   :  { %v1713_v48 = vpop.f32.mrf.mxu2  ;;  %v1715_v49 = vpop.f32.mrf.mxu3 }
  0x93   :  { %v111_v63 = vpop.f32.mrf.mxu0  ;;  %v140_v0 = vpop.f32.mrf.mxu1 }
  0x97   :  { %v1717_v50 = vpop.f32.mrf.mxu2  ;;  %v1719_v51 = vpop.f32.mrf.mxu3 }
  0x9b   :  { %v114_v6 = vpop.f32.mrf.mxu0  ;;  %v143_v7 = vpop.f32.mrf.mxu1 }
  0x9f   :  { %v1721_v52 = vpop.f32.mrf.mxu2  ;;  %v1723_v53 = vpop.f32.mrf.mxu3 }
  0xa3   :  { %v116_v25 = vpop.f32.mrf.mxu0  ;;  %v145_v27 = vpop.f32.mrf.mxu1 }
  0xa7   :  { %v1727_v56 = vpop.f32.mrf.mxu2  ;;  %v1729_v57 = vpop.f32.mrf.mxu3 }
  0xaf   :  { %v210_v60 = vpop.f32.mrf.mxu2  ;;  %v239_v61 = vpop.f32.mrf.mxu3 }
  0xb0   :  { %v211_v4 = vadd.f32 %v210_v60, %v109_v55  ;;  %v240_v12 = vadd.f32 %v239_v61, %v138_v58 }
  0xb2   :  { %v1737_v8 = vadd.f32 %v270_v5, %v211_v4  ;;  %v1744_v21 = vadd.f32 %v270_v5, %v240_v12 }
  0xb4   :  { %2765 = vst [vmem:[#allocation6_spill] sm:$0xff] %v1737_v8  ;;  %v1300_v15 = vmul.f32 -1.442695, %v1737_v8  ;;  %v1301_v30 = vmul.f32 -1.442695, %v1744_v21 }
  0xb5   :  { %2766 = vst [vmem:[#allocation7_spill] sm:$0xff] %v1744_v21 }
  0xb6   :  { %1377 = vpow2.f32 %v1300_v15 }
  0xb7   :  { %v212_v1 = vpop.f32.mrf.mxu2  ;;  %v241_v2 = vpop.f32.mrf.mxu3 }
  0xb8   :  { %v213_v16 = vadd.f32 %v212_v1, %v111_v63  ;;  %v242_v17 = vadd.f32 %v241_v2, %v140_v0 }
  0xba   :  { %v1748_v24 = vadd.f32 %v275_v18, %v213_v16  ;;  %v1750_v26 = vadd.f32 %v275_v18, %v242_v17 }
  0xbc   :  { %2767 = vst [vmem:[#allocation8_spill] sm:$0xff] %v1750_v26  ;;  %v1302_v32 = vmul.f32 -1.442695, %v1748_v24  ;;  %v1303_v35 = vmul.f32 -1.442695, %v1750_v26  ;;  %v1378_v37 = vpop.eup %1377 }
  0xbd   :  { %v1762_v43 = vadd.f32 1.0, %v1378_v37 }
  0xbf   :  { %v215_v10 = vpop.f32.mrf.mxu2  ;;  %v244_v11 = vpop.f32.mrf.mxu3 }
  0xc0   :  { %v216_v13 = vadd.f32 %v215_v10, %v114_v6  ;;  %v245_v14 = vadd.f32 %v244_v11, %v143_v7 }
  0xc2   :  { %v1740_v19 = vadd.f32 %v280_v9, %v216_v13  ;;  %v1742_v20 = vadd.f32 %v280_v9, %v245_v14 }
  0xc4   :  { %v1304_v22 = vmul.f32 -1.442695, %v1740_v19  ;;  %v1305_v23 = vmul.f32 -1.442695, %v1742_v20 }
  0xc6   :  { %1379 = vpow2.f32 %v1304_v22 }
  0xc7   :  { %v217_v28 = vpop.f32.mrf.mxu2  ;;  %v246_v29 = vpop.f32.mrf.mxu3  ;;  %1381 = vpow2.f32 %v1305_v23 }
  0xc8   :  { %v218_v31 = vadd.f32 %v217_v28, %v116_v25  ;;  %v247_v34 = vadd.f32 %v246_v29, %v145_v27  ;;  %1383 = vpow2.f32 %v1301_v30 }
  0xc9   :  { %1385 = vpow2.f32 %v1302_v32 }
  0xca   :  { %v1755_v36 = vadd.f32 %v285_v33, %v218_v31  ;;  %v1760_v41 = vadd.f32 %v285_v33, %v247_v34  ;;  %1387 = vpow2.f32 %v1303_v35 }
  0xcc   :  { %v1380_v38 = vpop.eup %1379  ;;  %v1306_v39 = vmul.f32 -1.442695, %v1755_v36  ;;  %v1307_v58 = vmul.f32 -1.442695, %v1760_v41 }
  0xcd   :  { %v1758_v40 = vadd.f32 1.0, %v1380_v38  ;;  %v1382_v42 = vpop.eup %1381 }
  0xce   :  { %v1765_v46 = vadd.f32 1.0, %v1382_v42  ;;  %v1384_v60 = vpop.eup %1383 }
  0xcf   :  { %1389 = vrcp.f32 %v1758_v40  ;;  %v220_v44 = vpop.f32.mrf.mxu2  ;;  %v249_v45 = vpop.f32.mrf.mxu3  ;;  %v1782_v4 = vadd.f32 1.0, %v1384_v60  ;;  %vm452_vm3 = vweird.f32 %v1758_v40  ;;  %v458_v25 = vand.u32 2147483648, %v1758_v40 }
  0xd0   :  { %1391 = vpow2.f32 %v1306_v39  ;;  %v221_v47 = vadd.f32 %v220_v44, %v1713_v48  ;;  %v250_v55 = vadd.f32 %v249_v45, %v1715_v49  ;;  %v1386_v0 = vpop.eup %1385  ;;  %v456_v31 = vand.u32 2147483647, %v1758_v40 }
  0xd1   :  { %1393 = vrcp.f32 %v1762_v43  ;;  %v1388_v1 = vpop.eup %1387  ;;  %v1784_v6 = vadd.f32 1.0, %v1386_v0  ;;  %v473_v32 = vand.u32 2147483648, %v1765_v46  ;;  %vm467_vm6 = vweird.f32 %v1765_v46 }
  0xd2   :  { %v1771_v61 = vadd.f32 %v1731_v59, %v221_v47  ;;  %v1774_v63 = vadd.f32 %v1731_v59, %v250_v55  ;;  %1395 = vrcp.f32 %v1765_v46  ;;  %v1788_v7 = vadd.f32 1.0, %v1388_v1 }
  0xd3   :  { %1397 = vpow2.f32 %v1307_v58  ;;  %v471_v47 = vand.u32 2147483647, %v1765_v46  ;;  %v459_v58 = vor.u32 1.1754944e-38, %v458_v25  ;;  %vm1845_vm5 = vcmp.eq.f32.partialorder %v456_v31, 8.507059e+37 }
  0xd4   :  { %v1308_v2 = vmul.f32 -1.442695, %v1771_v61  ;;  %v1309_v48 = vmul.f32 -1.442695, %v1774_v63 }
  0xd5   :  { %v1780_v49 = vpop.eup %1389  ;;  %vm1895_vm10 = vcmp.eq.f32.partialorder %v471_v47, 8.507059e+37 }
  0xd6   :  { %v1392_v5 = vpop.eup %1391  ;;  %1399 = vpow2.f32 %v1308_v2  ;;  %v448_v59 = vmul.f32 %v1780_v49, %v1758_v40  ;;  %vm453_vm4 = vweird.f32 %v1780_v49 }
  0xd7   :  { %v222_v9 = vpop.f32.mrf.mxu2  ;;  %v251_v10 = vpop.f32.mrf.mxu3  ;;  %1401 = vpow2.f32 %v1309_v48  ;;  %v1795_v14 = vadd.f32 1.0, %v1392_v5  ;;  %vm1870_vm8 = vmor %vm452_vm3, %vm453_vm4 }
  0xd8   :  { %v223_v11 = vadd.f32 %v222_v9, %v1717_v50  ;;  %v252_v12 = vadd.f32 %v251_v10, %v1719_v51  ;;  %v1792_v13 = vpop.eup %1393  ;;  %1403 = vrcp.f32 %v1782_v4  ;;  %v449_v18 = vsub.f32 1.0, %v448_v59 }
  0xd9   :  { %v1797_v15 = vpop.eup %1395  ;;  %1405 = vrcp.f32 %v1784_v6  ;;  %v388_v28 = vmul.f32 %v1792_v13, %v1762_v43  ;;  %v488_v39 = vand.u32 2147483648, %v1795_v14  ;;  %v486_v5 = vand.u32 2147483647, %v1795_v14 }
  0xda   :  { %v1801_v16 = vadd.f32 %v1735_v3, %v223_v11  ;;  %v1804_v17 = vadd.f32 %v1735_v3, %v252_v12  ;;  %v1398_v50 = vpop.eup %1397  ;;  %1407 = vrcp.f32 %v1788_v7  ;;  %v463_v3 = vmul.f32 %v1797_v15, %v1765_v46 }
  0xdb   :  { %1409 = vrcp.f32 %v1795_v14  ;;  %v450_v30 = vmul.f32 %v1780_v49, %v449_v18  ;;  %v1823_v34 = vadd.f32 1.0, %v1398_v50  ;;  %v389_v0 = vsub.f32 1.0, %v388_v28 }
  0xdc   :  { %v1400_v51 = vpop.eup %1399  ;;  %v1310_v22 = vmul.f32 -1.442695, %v1801_v16  ;;  %v1311_v23 = vmul.f32 -1.442695, %v1804_v17  ;;  %v464_v60 = vsub.f32 1.0, %v463_v3  ;;  %v1853_v59 = vor.u32 1.1754944e-38, %v488_v39 }
  0xdd   :  { %v1812_v27 = vadd.f32 1.0, %v1400_v51  ;;  %v1402_v29 = vpop.eup %1401  ;;  %v451_v48 = vadd.f32 %v1780_v49, %v450_v30  ;;  %vm468_vm7 = vweird.f32 %v1797_v15  ;;  %v1877_v25 = vmul.f32 %v1792_v13, %v389_v0 }
  0xde   :  { %1411 = vpow2.f32 %v1310_v22  ;;  %v1821_v33 = vpop.eup %1403  ;;  %v1826_v35 = vadd.f32 1.0, %v1402_v29  ;;  %v465_v22 = vmul.f32 %v1797_v15, %v464_v60  ;;  %vm482_vm14 = vweird.f32 %v1795_v14  ;;  %vm1931_vm15 = vmor %vm467_vm6, %vm468_vm7 }
  0xdf   :  { %1413 = vrcp.f32 %v1812_v27  ;;  %v225_v37 = vpop.f32.mrf.mxu2  ;;  %v254_v38 = vpop.f32.mrf.mxu3  ;;  %v516_v29 = vand.u32 2147483647, %v1812_v27  ;;  %v455_v40 = vsel %vm1870_vm8, %v1780_v49, %v451_v48  ;;  %vm512_vm9 = vweird.f32 %v1812_v27 }
  0xe0   :  { %v1829_v42 = vpop.eup %1405  ;;  %1415 = vpow2.f32 %v1311_v23  ;;  %v226_v44 = vadd.f32 %v225_v37, %v1721_v52  ;;  %v255_v45 = vadd.f32 %v254_v38, %v1723_v53  ;;  %v518_v0 = vand.u32 2147483648, %v1812_v27 }
  0xe1   :  { %v1834_v55 = vpop.eup %1407  ;;  %1417 = vrcp.f32 %v1826_v35  ;;  %vm1914_vm11 = vcmp.eq.f32.partialorder %v516_v29, 8.507059e+37  ;;  %v531_v51 = vand.u32 2147483647, %v1826_v35  ;;  %vm527_vm0 = vweird.f32 %v1826_v35 }
  0xe2   :  { %v1838_v1 = vadd.f32 %v1725_v54, %v226_v44  ;;  %v1841_v2 = vadd.f32 %v1725_v54, %v255_v45  ;;  %v1849_v53 = vpop.eup %1409  ;;  %1419 = vrcp.f32 %v1823_v34  ;;  %v1856_v54 = vor.u32 1.1754944e-38, %v473_v32 }
  0xe3   :  { %v478_v38 = vmul.f32 %v1849_v53, %v1795_v14  ;;  %vm483_vm12 = vweird.f32 %v1849_v53  ;;  %vm1974_vm3 = vcmp.eq.f32.partialorder %v486_v5, 8.507059e+37  ;;  %vm1994_vm6 = vcmp.eq.f32.partialorder %v531_v51, 8.507059e+37 }
  0xe4   :  { %v1412_v9 = vpop.eup %1411  ;;  %v1312_v10 = vmul.f32 -1.442695, %v1838_v1  ;;  %v1313_v11 = vmul.f32 -1.442695, %v1841_v2 }
  0xe5   :  { %v1862_v18 = vpop.eup %1413  ;;  %v1864_v50 = vadd.f32 1.0, %v1412_v9  ;;  %v533_v9 = vand.u32 2147483648, %v1826_v35 }
  0xe6   :  { %v1416_v3 = vpop.eup %1415  ;;  %1421 = vpow2.f32 %v1312_v10  ;;  %v508_v28 = vmul.f32 %v1862_v18, %v1812_v27  ;;  %v466_v10 = vadd.f32 %v1797_v15, %v465_v22  ;;  %vm513_vm13 = vweird.f32 %v1862_v18 }
  0xe7   :  { %v1885_v30 = vpop.eup %1417  ;;  %1423 = vrcp.f32 %v1864_v50  ;;  %v1888_v31 = vadd.f32 1.0, %v1416_v3  ;;  %v227_v32 = vpop.f32.mrf.mxu2  ;;  %v460_v22 = vsel %vm1845_vm5, %v459_v58, %v455_v40  ;;  %v479_v3 = vsub.f32 1.0, %v478_v38  ;;  %vm1956_vm1 = vmor %vm512_vm9, %vm513_vm13 }
  0xe8   :  { %v256_v37 = vpop.f32.mrf.mxu3  ;;  %1425 = vpow2.f32 %v1313_v11  ;;  %v228_v39 = vadd.f32 %v227_v32, %v1727_v56  ;;  %v509_v45 = vsub.f32 1.0, %v508_v28  ;;  %v1899_v60 = vpop.eup %1419  ;;  %v523_v48 = vmul.f32 %v1885_v30, %v1826_v35 }
  0xe9   :  { %v257_v44 = vadd.f32 %v256_v37, %v1729_v57  ;;  %1427 = vrcp.f32 %v1888_v31  ;;  %v519_v40 = vor.u32 1.1754944e-38, %v518_v0  ;;  %v1940_v38 = vor.u32 1.1754944e-38, %v533_v9 }
  0xea   :  { %v1908_v56 = vadd.f32 %v1733_v62, %v228_v39  ;;  %v510_v47 = vmul.f32 %v1862_v18, %v509_v45  ;;  %v524_v37 = vsub.f32 1.0, %v523_v48  ;;  %v546_v48 = vand.u32 2147483647, %v1864_v50 }
  0xeb   :  { %v1911_v57 = vadd.f32 %v1733_v62, %v257_v44  ;;  %v470_v44 = vsel %vm1931_vm15, %v1797_v15, %v466_v10  ;;  %v480_v15 = vmul.f32 %v1849_v53, %v479_v3  ;;  %v1962_v10 = vmul.f32 %v460_v22, %v1740_v19 }
  0xec   :  { %v1422_v28 = vpop.eup %1421  ;;  %v1314_v62 = vmul.f32 -1.442695, %v1908_v56  ;;  %v511_v29 = vadd.f32 %v1862_v18, %v510_v47  ;;  %v548_v47 = vand.u32 2147483648, %v1864_v50  ;;  %vm542_vm2 = vweird.f32 %v1864_v50 }
  0xed   :  { %v1315_v32 = vmul.f32 -1.442695, %v1911_v57  ;;  %v1935_v58 = vpop.eup %1423  ;;  %v1937_v52 = vadd.f32 1.0, %v1422_v28  ;;  %v1981_v19 = vsel %vm1895_vm10, %v1856_v54, %v470_v44  ;;  %vm1989_vm4 = vcmp.eq.f32.partialorder %v546_v48, 8.507059e+37  ;;  %vm2020_vm10 = vmor %vm482_vm14, %vm483_vm12 }
  0xee   :  { %v1426_v45 = vpop.eup %1425  ;;  %1429 = vpow2.f32 %v1314_v62  ;;  %v538_v46 = vmul.f32 %v1935_v58, %v1864_v50  ;;  %v515_v62 = vsel %vm1956_vm1, %v1862_v18, %v511_v29  ;;  %v1985_v18 = vmul.f32 %v1899_v60, %v1823_v34 }
  0xef   :  { %1431 = vrcp.f32 %v1937_v52  ;;  %v1950_v0 = vadd.f32 1.0, %v1426_v45  ;;  %v1964_v28 = vpop.eup %1427  ;;  %v525_v45 = vmul.f32 %v1885_v30, %v524_v37  ;;  %v578_v22 = vand.u32 2147483648, %v1937_v52 }
  0xf0   :  { %1433 = vpow2.f32 %v1315_v32  ;;  %v539_v39 = vsub.f32 1.0, %v538_v46  ;;  %v549_v5 = vor.u32 1.1754944e-38, %v548_v47  ;;  %vm528_vm5 = vweird.f32 %v1885_v30 }
  0xf1   :  { %1435 = vrcp.f32 %v1950_v0  ;;  %v520_v54 = vsel %vm1914_vm11, %v519_v40, %v515_v62  ;;  %v553_v49 = vmul.f32 %v1964_v28, %v1888_v31  ;;  %v561_v37 = vand.u32 2147483647, %v1888_v31  ;;  %vm2037_vm12 = vmor %vm527_vm0, %vm528_vm5 }
  0xf2   :  { %v540_v3 = vmul.f32 %v1935_v58, %v539_v39  ;;  %v481_v44 = vadd.f32 %v1849_v53, %v480_v15  ;;  %vm543_vm7 = vweird.f32 %v1935_v58  ;;  %v526_v51 = vadd.f32 %v1885_v30, %v525_v45 }
  0xf3   :  { %vm557_vm8 = vweird.f32 %v1888_v31  ;;  %v563_v47 = vand.u32 2147483648, %v1888_v31  ;;  %vm572_vm9 = vweird.f32 %v1937_v52  ;;  %v576_v9 = vand.u32 2147483647, %v1937_v52  ;;  %vm2050_vm13 = vmor %vm542_vm2, %vm543_vm7 }
  0xf4   :  { %v1430_v46 = vpop.eup %1429  ;;  %v541_v48 = vadd.f32 %v1935_v58, %v540_v3  ;;  %v593_v15 = vand.u32 2147483648, %v1950_v0  ;;  %v2026_v3 = vor.u32 1.1754944e-38, %v578_v22  ;;  %vm587_vm11 = vweird.f32 %v1950_v0 }
  0xf5   :  { %v2009_v11 = vpop.eup %1431  ;;  %v2011_v40 = vadd.f32 1.0, %v1430_v46  ;;  %v591_v46 = vand.u32 2147483647, %v1950_v0  ;;  %v2031_v23 = vmul.f32 %v520_v54, %v1771_v61  ;;  %v554_v54 = vsub.f32 1.0, %v553_v49 }
  0xf6   :  { %v1434_v39 = vpop.eup %1433  ;;  %v568_v45 = vmul.f32 %v2009_v11, %v1937_v52  ;;  %v485_v35 = vsel %vm2020_vm10, %v1849_v53, %v481_v44  ;;  %v530_v50 = vsel %vm2037_vm12, %v1885_v30, %v526_v51  ;;  %vm2065_vm14 = vcmp.eq.f32.partialorder %v561_v37, 8.507059e+37 }
  0xf7   :  { %v2041_v12 = vpop.eup %1435  ;;  %1437 = vrcp.f32 %v2011_v40  ;;  %v2044_v22 = vadd.f32 1.0, %v1434_v39  ;;  %v545_v39 = vsel %vm2050_vm13, %v1935_v58, %v541_v48  ;;  %v594_v49 = vor.u32 1.1754944e-38, %v593_v15 }
  0xf8   :  { %v569_v26 = vsub.f32 1.0, %v568_v45  ;;  %v583_v21 = vmul.f32 %v2041_v12, %v1950_v0  ;;  %vm558_vm15 = vweird.f32 %v1964_v28  ;;  %v564_v53 = vor.u32 1.1754944e-38, %v563_v47 }
  0xf9   :  { %1439 = vrcp.f32 %v2044_v22  ;;  %vm2072_vm0 = vcmp.eq.f32.partialorder %v576_v9, 8.507059e+37  ;;  %v606_v58 = vand.u32 2147483647, %v2011_v40  ;;  %vm2077_vm1 = vcmp.eq.f32.partialorder %v591_v46, 8.507059e+37 }
  0xfa   :  { %v570_v44 = vmul.f32 %v2009_v11, %v569_v26  ;;  %v584_v48 = vsub.f32 1.0, %v583_v21  ;;  %v490_v37 = vsel %vm1974_vm3, %v1853_v59, %v485_v35  ;;  %vm573_vm2 = vweird.f32 %v2009_v11 }
  0xfb   :  { %v550_v26 = vsel %vm1989_vm4, %v549_v5, %v545_v39  ;;  %v535_v51 = vsel %vm1994_vm6, %v1940_v38, %v530_v50  ;;  %v555_v47 = vmul.f32 %v1964_v28, %v554_v54  ;;  %vm497_vm5 = vweird.f32 %v1823_v34  ;;  %vm2105_vm4 = vmor %vm557_vm8, %vm558_vm15 }
  0xfc   :  { %v571_v21 = vadd.f32 %v2009_v11, %v570_v44  ;;  %v585_v9 = vmul.f32 %v2041_v12, %v584_v48  ;;  %vm588_vm7 = vweird.f32 %v2041_v12  ;;  %v2096_v59 = vmul.f32 %v550_v26, %v1801_v16  ;;  %vm2114_vm6 = vmor %vm572_vm9, %vm573_vm2 }
  0xfd   :  { %v1438_v27 = vpop.eup %1437  ;;  %vm602_vm3 = vweird.f32 %v2011_v40  ;;  %v608_v32 = vand.u32 2147483648, %v2011_v40  ;;  %v556_v38 = vadd.f32 %v1964_v28, %v555_v47  ;;  %v494_v29 = vsub.f32 1.0, %v1985_v18  ;;  %vm2127_vm8 = vmor %vm587_vm11, %vm588_vm7 }
  0xfe   :  { %v598_v15 = vmul.f32 %v1438_v27, %v2011_v40  ;;  %vm2119_vm10 = vcmp.eq.f32.partialorder %v606_v58, 8.507059e+37  ;;  %v586_v31 = vadd.f32 %v2041_v12, %v585_v9  ;;  %v621_v46 = vand.u32 2147483647, %v2044_v22 }
  0xff   :  { %v1440_v14 = vpop.eup %1439  ;;  %v623_v52 = vand.u32 2147483648, %v2044_v22  ;;  %v655_v61 = vpack.c.bf16 %v2096_v59, %v2031_v23  ;;  %v560_v54 = vsel %vm2105_vm4, %v1964_v28, %v556_v38  ;;  %v2138_v35 = vmul.f32 %v535_v51, %v1774_v63 }
 0x100   :  { %v575_v0 = vsel %vm2114_vm6, %v2009_v11, %v571_v21  ;;  %v599_v39 = vsub.f32 1.0, %v598_v15  ;;  %v590_v50 = vsel %vm2127_vm8, %v2041_v12, %v586_v31  ;;  %v613_v44 = vmul.f32 %v1440_v14, %v2044_v22 }
 0x101   :  { %v2806_v58 = vand.u32 2147483647, %v1823_v34  ;;  %v565_v63 = vsel %vm2065_vm14, %v564_v53, %v560_v54  ;;  %v2156_v28 = vmul.f32 %v490_v37, %v1755_v36  ;;  %v495_v11 = vmul.f32 %v1899_v60, %v494_v29 }
 0x102   :  { %vm498_vm11 = vweird.f32 %v1899_v60  ;;  %v600_v26 = vmul.f32 %v1438_v27, %v599_v39  ;;  %vm603_vm12 = vweird.f32 %v1438_v27  ;;  %v614_v12 = vsub.f32 1.0, %v613_v44 }
 0x103   :  { %vm2149_vm9 = vcmp.eq.f32.partialorder %v2806_v58, 8.507059e+37  ;;  %v2161_v51 = vmul.f32 %v565_v63, %v1804_v17  ;;  %v580_v47 = vsel %vm2072_vm0, %v2026_v3, %v575_v0  ;;  %v595_v8 = vsel %vm2077_vm1, %v594_v49, %v590_v50  ;;  %vm2174_vm15 = vmor %vm497_vm5, %vm498_vm11  ;;  %v2818_v49 = vld [vmem:[#allocation8_spill] sm:$0xff] }
 0x104   :  { %vm617_vm13 = vweird.f32 %v2044_v22  ;;  %v496_v36 = vadd.f32 %v1899_v60, %v495_v11  ;;  %v601_v53 = vadd.f32 %v1438_v27, %v600_v26  ;;  %v615_v37 = vmul.f32 %v1440_v14, %v614_v12  ;;  %vm604_vm0 = vmor %vm602_vm3, %vm603_vm12 }
 0x105   :  { %vm618_vm14 = vweird.f32 %v1440_v14  ;;  %v656_v21 = vpack.c.bf16 %v2161_v51, %v2138_v35  ;;  %v609_v3 = vor.u32 1.1754944e-38, %v608_v32  ;;  %vm2180_vm1 = vcmp.eq.f32.partialorder %v621_v46, 8.507059e+37 }
 0x106   :  { %v624_v62 = vor.u32 1.1754944e-38, %v623_v52  ;;  %v653_v30 = vpack.c.bf16 %v2156_v28, %v1962_v10  ;;  %v605_v9 = vsel %vm604_vm0, %v1438_v27, %v601_v53  ;;  %v616_v38 = vadd.f32 %v1440_v14, %v615_v37  ;;  %vm619_vm2 = vmor %vm617_vm13, %vm618_vm14  ;;  %v1366_v10 = vld [vmem:[%s2757_s5] sm:$0xff]  ;;  %v2817_v28 = vld [vmem:[#allocation7_spill] sm:$0xff] }
 0x107   :  { %v500_v5 = vsel %vm2174_vm15, %v1899_v60, %v496_v36  ;;  %v418_v29 = vmul.f32 %v1829_v42, %v1784_v6  ;;  %v610_v40 = vsel %vm2119_vm10, %v609_v3, %v605_v9  ;;  %v639_v32 = vmul.f32 %v580_v47, %v1838_v1  ;;  %v1369_v9 = vld [vmem:[%s2757_s5 + $0x18] sm:$0xff] }
 0x108   :  { %v640_v16 = vmul.f32 %v595_v8, %v1841_v2  ;;  %v2813_v27 = vand.u32 2147483648, %v1823_v34  ;;  %v641_v31 = vmul.f32 %v610_v40, %v1908_v56  ;;  %v620_v46 = vsel %vm619_vm2, %v1440_v14, %v616_v38  ;;  %v670_v40 = vpop.permute.xlu2 %669 }
 0x109   :  { %v391_v60 = vadd.f32 %v1792_v13, %v1877_v25  ;;  %v419_v18 = vsub.f32 1.0, %v418_v29  ;;  %v625_v45 = vsel %vm2180_vm1, %v624_v62, %v620_v46  ;;  %vm393_vm5 = vweird.f32 %v1792_v13 }
 0x10a   :  { %v504_v15 = vor.u32 1.1754944e-38, %v2813_v27  ;;  %v398_v2 = vand.u32 2147483648, %v1762_v43  ;;  %v657_v22 = vpack.c.bf16 %v641_v31, %v639_v32  ;;  %v642_v34 = vmul.f32 %v625_v45, %v1911_v57  ;;  %v680_v45 = vpop.permute.xlu1 %679 }
 0x10b   :  { %v420_v56 = vmul.f32 %v1829_v42, %v419_v18  ;;  %vm423_vm7 = vweird.f32 %v1829_v42  ;;  %vm392_vm3 = vweird.f32 %v1762_v43  ;;  %v426_v25 = vand.u32 2147483647, %v1784_v6 }
 0x10c   :  { %v505_v1 = vsel %vm2149_vm9, %v504_v15, %v500_v5  ;;  %v428_v14 = vand.u32 2147483648, %v1784_v6  ;;  %v403_v52 = vmul.f32 %v1821_v33, %v1782_v4  ;;  %744 = vmatpush.bf16.msrb.mxu0 %v657_v22  ;;  %v658_v54 = vpack.c.bf16 %v642_v34, %v640_v16  ;;  %vm2216_vm4 = vmor %vm392_vm3, %vm393_vm5  ;;  %v675_v16 = vpop.permute.xlu0 %674 }
 0x10d   :  { %v396_v57 = vand.u32 2147483647, %v1762_v43  ;;  %v421_v0 = vadd.f32 %v1829_v42, %v420_v56  ;;  %vm422_vm6 = vweird.f32 %v1784_v6  ;;  %v634_v39 = vmul.f32 %v505_v1, %v1760_v41 }
 0x10e   :  { %v395_v50 = vsel %vm2216_vm4, %v1792_v13, %v391_v60  ;;  %vm424_vm10 = vmor %vm422_vm6, %vm423_vm7  ;;  %v429_v44 = vor.u32 1.1754944e-38, %v428_v14  ;;  %v404_v58 = vsub.f32 1.0, %v403_v52  ;;  %773 = vmatpush.bf16.msrb.mxu1 %v658_v54  ;;  %v399_v48 = vor.u32 1.1754944e-38, %v398_v2 }
 0x10f   :  { %v425_v63 = vsel %vm424_vm10, %v1829_v42, %v421_v0  ;;  %vm427_vm8 = vcmp.eq.f32.partialorder %v426_v25, 8.507059e+37  ;;  %v433_v43 = vmul.f32 %v1834_v55, %v1788_v7  ;;  %vm408_vm9 = vweird.f32 %v1821_v33 }
 0x110   :  { %v430_v11 = vsel %vm427_vm8, %v429_v44, %v425_v63  ;;  %v405_v6 = vmul.f32 %v1821_v33, %v404_v58  ;;  %v413_v41 = vand.u32 2147483648, %v1782_v4  ;;  %745 = vmatpush.bf16.msrb.mxu0 %v655_v61  ;;  %v632_v13 = vmul.f32 %v1981_v19, %v1742_v20  ;;  %v685_v0 = vpop.permute.xlu2 %684 }
 0x111   :  { %vm397_vm11 = vcmp.eq.f32.partialorder %v396_v57, 8.507059e+37  ;;  %v411_v42 = vand.u32 2147483647, %v1782_v4  ;;  %v434_v26 = vsub.f32 1.0, %v433_v43  ;;  %vm407_vm12 = vweird.f32 %v1782_v4  ;;  %v2816_v4 = vld [vmem:[#allocation6_spill] sm:$0xff] }
 0x112   :  { %v400_v12 = vsel %vm397_vm11, %v399_v48, %v395_v50  ;;  %v406_v51 = vadd.f32 %v1821_v33, %v405_v6  ;;  %v443_v47 = vand.u32 2147483648, %v1788_v7  ;;  %774 = vmatpush.bf16.msrb.mxu1 %v656_v21  ;;  %v629_v8 = vmul.f32 %v430_v11, %v1748_v24  ;;  %vm409_vm13 = vmor %vm407_vm12, %vm408_vm9 }
 0x113   :  { %v435_v23 = vmul.f32 %v1834_v55, %v434_v26  ;;  %vm438_vm14 = vweird.f32 %v1834_v55  ;;  %v441_v20 = vand.u32 2147483647, %v1788_v7  ;;  %v654_v19 = vpack.c.bf16 %v634_v39, %v632_v13 }
 0x114   :  { %v410_v59 = vsel %vm409_vm13, %v1821_v33, %v406_v51  ;;  %v414_v61 = vor.u32 1.1754944e-38, %v413_v41  ;;  %746 = vmatpush.bf16.msrb.mxu0 %v653_v30  ;;  %v627_v36 = vmul.f32 %v400_v12, %v2816_v4  ;;  %vm412_vm15 = vcmp.eq.f32.partialorder %v411_v42, 8.507059e+37  ;;  %v1368_v30 = vld [vmem:[%s2757_s5 + $0x10] sm:$0xff] }
 0x115   :  { %v436_v24 = vadd.f32 %v1834_v55, %v435_v23  ;;  %vm437_vm0 = vweird.f32 %v1788_v7  ;;  %v444_v37 = vor.u32 1.1754944e-38, %v443_v47  ;;  %vm442_vm2 = vcmp.eq.f32.partialorder %v441_v20, 8.507059e+37  ;;  %v690_v47 = vpop.permute.xlu0 %689 }
 0x116   :  { %v415_v53 = vsel %vm412_vm15, %v414_v61, %v410_v59  ;;  %vm439_vm1 = vmor %vm437_vm0, %vm438_vm14  ;;  %775 = vmatpush.bf16.msrb.mxu1 %v654_v19  ;;  %v651_v21 = vpack.c.bf16 %v629_v8, %v627_v36  ;;  %vm727_vm5 = vcmask 523264  }
 0x117   :  { %v440_v17 = vsel %vm439_vm1, %v1834_v55, %v436_v24  ;;  %v628_v3 = vmul.f32 %v415_v53, %v2817_v28  ;;  %v1367_v55 = vld [vmem:[%s2757_s5 + $0x8] sm:$0xff]  ;;  %s1532_s5 = smov [#allocation3]  }
 0x118   :  { %v445_v33 = vsel %vm442_vm2, %v444_v37, %v440_v17  ;;  %747 = vmatpush.bf16.msrb.mxu0 %v651_v21  ;;  %v695_v17 = vpop.permute.xlu1 %694  ;;  %s1233_s15 = sshll.u32 %s1532_s5, 4  ;;  %s1234_s15 = int_to_ptr.vmem [resolvable:$true] %s1233_s15 }
 0x119   :  { %v630_v62 = vmul.f32 %v445_v33, %v2818_v49 }
 0x11b   :  { %v652_v7 = vpack.c.bf16 %v630_v62, %v628_v3  ;;  %1332 = vmatmul.msk.bf16.vlgmr.msrb.gmra.mxu0 %vm727_vm5, %v1366_v10 }
 0x11d   :  { %776 = vmatpush.bf16.msrb.mxu1 %v652_v7 }
 0x120   :  { %1336 = vmatmul.msk.bf16.vlgmr.msrb.gmra.mxu1 %vm727_vm5, %v1366_v10 }
 0x12b   :  { %1333 = vmatmul.msk.bf16.gmra.mxu0 %vm727_vm5, %v1367_v55 }
 0x130   :  { %1337 = vmatmul.msk.bf16.gmra.mxu1 %vm727_vm5, %v1367_v55 }
 0x13b   :  { %1334 = vmatmul.msk.bf16.gmra.mxu0 %vm727_vm5, %v1368_v30 }
 0x140   :  { %1338 = vmatmul.msk.bf16.gmra.mxu1 %vm727_vm5, %v1368_v30 }
 0x14b   :  { %1335 = vmatmul.msk.bf16.gmra.mxu0 %vm727_vm5, %v1369_v9 }
 0x150   :  { %1339 = vmatmul.msk.bf16.gmra.mxu1 %vm727_vm5, %v1369_v9 }
 0x198   :  { %v749_v38 = vpop.f32.mrf.mxu0 }
 0x199   :  { %v2268_v32 = vadd.f32 %v749_v38, %v670_v40 }
 0x19b   :  { %v1340_v27 = vmul.f32 -1.442695, %v2268_v32 }
 0x19d   :  { %v778_v5 = vpop.f32.mrf.mxu1  ;;  %1441 = vpow2.f32 %v1340_v27 }
 0x19e   :  { %v2273_v60 = vadd.f32 %v778_v5, %v670_v40 }
 0x1a0   :  { %v751_v29 = vpop.f32.mrf.mxu0  ;;  %v1341_v2 = vmul.f32 -1.442695, %v2273_v60 }
 0x1a1   :  { %v2271_v15 = vadd.f32 %v751_v29, %v675_v16 }
 0x1a3   :  { %v1342_v18 = vmul.f32 -1.442695, %v2271_v15  ;;  %v1442_v22 = vpop.eup %1441 }
 0x1a4   :  { %v2282_v52 = vadd.f32 1.0, %v1442_v22 }
 0x1a5   :  { %v780_v31 = vpop.f32.mrf.mxu1  ;;  %1443 = vpow2.f32 %v1342_v18 }
 0x1a6   :  { %v2280_v25 = vadd.f32 %v780_v31, %v675_v16  ;;  %1445 = vpow2.f32 %v1341_v2  ;;  %v871_v28 = vand.u32 2147483647, %v2282_v52  ;;  %v873_v55 = vand.u32 2147483648, %v2282_v52  ;;  %v2345_v16 = vpop.permute.xlu2 %699 }
 0x1a7   :  { %vm867_vm7 = vweird.f32 %v2282_v52 }
 0x1a8   :  { %v754_v46 = vpop.f32.mrf.mxu0  ;;  %v1343_v57 = vmul.f32 -1.442695, %v2280_v25  ;;  %vm2347_vm4 = vcmp.eq.f32.partialorder %v871_v28, 8.507059e+37  ;;  %v874_v18 = vor.u32 1.1754944e-38, %v873_v55 }
 0x1a9   :  { %v2276_v1 = vadd.f32 %v754_v46, %v680_v45 }
 0x1ab   :  { %v1344_v34 = vmul.f32 -1.442695, %v2276_v1  ;;  %v1444_v54 = vpop.eup %1443 }
 0x1ac   :  { %v2288_v39 = vadd.f32 1.0, %v1444_v54  ;;  %v1446_v50 = vpop.eup %1445 }
 0x1ad   :  { %v783_v56 = vpop.f32.mrf.mxu1  ;;  %1447 = vpow2.f32 %v1344_v34  ;;  %v2293_v43 = vadd.f32 1.0, %v1446_v50 }
 0x1ae   :  { %v2284_v35 = vadd.f32 %v783_v56, %v680_v45  ;;  %1449 = vrcp.f32 %v2282_v52  ;;  %v901_v45 = vand.u32 2147483647, %v2288_v39  ;;  %vm897_vm8 = vweird.f32 %v2288_v39 }
 0x1af   :  { %1451 = vpow2.f32 %v1343_v57  ;;  %v888_v29 = vand.u32 2147483648, %v2293_v43  ;;  %vm882_vm10 = vweird.f32 %v2293_v43  ;;  %v886_v54 = vand.u32 2147483647, %v2293_v43 }
 0x1b0   :  { %v756_v14 = vpop.f32.mrf.mxu0  ;;  %v1345_v44 = vmul.f32 -1.442695, %v2284_v35  ;;  %1453 = vrcp.f32 %v2288_v39  ;;  %v903_v57 = vand.u32 2147483648, %v2288_v39  ;;  %vm2382_vm11 = vcmp.eq.f32.partialorder %v901_v45, 8.507059e+37 }
 0x1b1   :  { %v2291_v58 = vadd.f32 %v756_v14, %v685_v0  ;;  %vm2393_vm13 = vcmp.eq.f32.partialorder %v886_v54, 8.507059e+37 }
 0x1b2   :  { %1455 = vpow2.f32 %v1345_v44 }
 0x1b3   :  { %v1448_v48 = vpop.eup %1447  ;;  %v1346_v11 = vmul.f32 -1.442695, %v2291_v58  ;;  %1457 = vrcp.f32 %v2293_v43 }
 0x1b4   :  { %v2297_v41 = vpop.eup %1449  ;;  %v2299_v13 = vadd.f32 1.0, %v1448_v48  ;;  %v889_v48 = vor.u32 1.1754944e-38, %v888_v29 }
 0x1b5   :  { %v785_v63 = vpop.f32.mrf.mxu1  ;;  %v1452_v42 = vpop.eup %1451  ;;  %v863_v26 = vmul.f32 %v2297_v41, %v2282_v52  ;;  %1459 = vpow2.f32 %v1346_v11  ;;  %vm868_vm3 = vweird.f32 %v2297_v41 }
 0x1b6   :  { %v2304_v12 = vpop.eup %1453  ;;  %1461 = vrcp.f32 %v2299_v13  ;;  %v2307_v8 = vadd.f32 1.0, %v1452_v42  ;;  %v2309_v23 = vadd.f32 %v785_v63, %v685_v0  ;;  %vm2360_vm6 = vmor %vm867_vm7, %vm868_vm3  ;;  %vm927_vm2 = vweird.f32 %v2299_v13 }
 0x1b7   :  { %v864_v19 = vsub.f32 1.0, %v863_v26  ;;  %v893_v4 = vmul.f32 %v2304_v12, %v2288_v39  ;;  %vm898_vm9 = vweird.f32 %v2304_v12 }
 0x1b8   :  { %v759_v6 = vpop.f32.mrf.mxu0  ;;  %v1456_v51 = vpop.eup %1455  ;;  %1463 = vrcp.f32 %v2307_v8  ;;  %v1347_v53 = vmul.f32 -1.442695, %v2309_v23  ;;  %vm2403_vm14 = vmor %vm897_vm8, %vm898_vm9  ;;  %v916_v28 = vand.u32 2147483647, %v2307_v8  ;;  %vm912_vm15 = vweird.f32 %v2307_v8 }
 0x1b9   :  { %v2311_v20 = vadd.f32 %v759_v6, %v690_v47  ;;  %v2313_v61 = vpop.eup %1457  ;;  %v2317_v36 = vadd.f32 1.0, %v1456_v51  ;;  %v865_v10 = vmul.f32 %v2297_v41, %v864_v19  ;;  %v894_v62 = vsub.f32 1.0, %v893_v4  ;;  %v2471_v51 = vpop.permute.xlu1 %1128 }
 0x1ba   :  { %v878_v49 = vmul.f32 %v2313_v61, %v2293_v43  ;;  %vm883_vm12 = vweird.f32 %v2313_v61  ;;  %vm2444_vm7 = vcmp.eq.f32.partialorder %v916_v28, 8.507059e+37  ;;  %v2497_v28 = vpop.permute.xlu2 %1133 }
 0x1bb   :  { %v1460_v24 = vpop.eup %1459  ;;  %v1348_v33 = vmul.f32 -1.442695, %v2311_v20  ;;  %1465 = vrcp.f32 %v2317_v36  ;;  %v866_v5 = vadd.f32 %v2297_v41, %v865_v10  ;;  %v895_v46 = vmul.f32 %v2304_v12, %v894_v62  ;;  %vm2429_vm1 = vmor %vm882_vm10, %vm883_vm12 }
 0x1bc   :  { %v2321_v21 = vpop.eup %1461  ;;  %v2331_v7 = vadd.f32 1.0, %v1460_v24  ;;  %1467 = vpow2.f32 %v1347_v53  ;;  %v879_v31 = vsub.f32 1.0, %v878_v49  ;;  %v904_v24 = vor.u32 1.1754944e-38, %v903_v57 }
 0x1bd   :  { %v788_v59 = vpop.f32.mrf.mxu1  ;;  %v923_v30 = vmul.f32 %v2321_v21, %v2299_v13  ;;  %1469 = vpow2.f32 %v1348_v33  ;;  %v870_v52 = vsel %vm2360_vm6, %v2297_v41, %v866_v5  ;;  %v896_v42 = vadd.f32 %v2304_v12, %v895_v46 }
 0x1be   :  { %v2338_v38 = vpop.eup %1463  ;;  %v2343_v40 = vadd.f32 %v788_v59, %v690_v47  ;;  %1471 = vrcp.f32 %v2331_v7  ;;  %v880_v6 = vmul.f32 %v2313_v61, %v879_v31  ;;  %v875_v33 = vsel %vm2347_vm4, %v874_v18, %v870_v52 }
 0x1bf   :  { %v924_v2 = vsub.f32 1.0, %v923_v30  ;;  %v908_v0 = vmul.f32 %v2338_v38, %v2307_v8  ;;  %v900_v55 = vsel %vm2403_vm14, %v2304_v12, %v896_v42  ;;  %v933_v30 = vand.u32 2147483648, %v2299_v13 }
 0x1c0   :  { %v761_v37 = vpop.f32.mrf.mxu0  ;;  %v1349_v63 = vmul.f32 -1.442695, %v2343_v40  ;;  %v881_v62 = vadd.f32 %v2313_v61, %v880_v6  ;;  %vm928_vm0 = vweird.f32 %v2321_v21  ;;  %v918_v46 = vand.u32 2147483648, %v2307_v8 }
 0x1c1   :  { %v2326_v3 = vadd.f32 %v761_v37, %v695_v17  ;;  %v2354_v56 = vpop.eup %1465  ;;  %v925_v41 = vmul.f32 %v2321_v21, %v924_v2  ;;  %v909_v53 = vsub.f32 1.0, %v908_v0  ;;  %v931_v18 = vand.u32 2147483647, %v2299_v13  ;;  %v2437_v2 = vpop.permute.xlu0 %704  ;;  %vm2450_vm3 = vmor %vm927_vm2, %vm928_vm0 }
 0x1c2   :  { %v1468_v44 = vpop.eup %1467  ;;  %v938_v47 = vmul.f32 %v2354_v56, %v2317_v36  ;;  %v885_v43 = vsel %vm2429_vm1, %v2313_v61, %v881_v62  ;;  %vm913_vm5 = vweird.f32 %v2338_v38  ;;  %v934_v54 = vor.u32 1.1754944e-38, %v933_v30 }
 0x1c3   :  { %v1350_v9 = vmul.f32 -1.442695, %v2326_v3  ;;  %v1470_v11 = vpop.eup %1469  ;;  %v2397_v37 = vadd.f32 1.0, %v1468_v44  ;;  %v910_v29 = vmul.f32 %v2338_v38, %v909_v53  ;;  %vm932_vm4 = vcmp.eq.f32.partialorder %v931_v18, 8.507059e+37  ;;  %vm2485_vm6 = vmor %vm912_vm15, %vm913_vm5 }
 0x1c4   :  { %v2390_v59 = vpop.eup %1471  ;;  %v2408_v49 = vadd.f32 1.0, %v1470_v11  ;;  %v939_v5 = vsub.f32 1.0, %v938_v47  ;;  %v890_v11 = vsel %vm2393_vm13, %v889_v48, %v885_v43  ;;  %v946_v6 = vand.u32 2147483647, %v2317_v36 }
 0x1c5   :  { %1473 = vpow2.f32 %v1350_v9  ;;  %v790_v22 = vpop.f32.mrf.mxu1  ;;  %v926_v9 = vadd.f32 %v2321_v21, %v925_v41  ;;  %v953_v27 = vmul.f32 %v2390_v59, %v2331_v7  ;;  %v911_v0 = vadd.f32 %v2338_v38, %v910_v29 }
 0x1c6   :  { %v2380_v26 = vadd.f32 %v790_v22, %v695_v17  ;;  %1475 = vpow2.f32 %v1349_v63  ;;  %v1102_v22 = vmul.f32 %v875_v33, %v2268_v32  ;;  %v905_v32 = vsel %vm2382_vm11, %v904_v24, %v900_v55 }
 0x1c7   :  { %v930_v61 = vsel %vm2450_vm3, %v2321_v21, %v926_v9  ;;  %v940_v57 = vmul.f32 %v2354_v56, %v939_v5  ;;  %v954_v44 = vsub.f32 1.0, %v953_v27  ;;  %v948_v21 = vand.u32 2147483648, %v2317_v36 }
 0x1c8   :  { %v764_v34 = vpop.f32.mrf.mxu0  ;;  %v1351_v39 = vmul.f32 -1.442695, %v2380_v26  ;;  %v1104_v41 = vmul.f32 %v905_v32, %v2271_v15  ;;  %v935_v47 = vsel %vm932_vm4, %v934_v54, %v930_v61  ;;  %v1166_v48 = vmul.f32 %v2471_v51, %v1102_v22 }
 0x1c9   :  { %v2370_v50 = vadd.f32 %v764_v34, %v2345_v16  ;;  %v919_v53 = vor.u32 1.1754944e-38, %v918_v46  ;;  %v941_v15 = vadd.f32 %v2354_v56, %v940_v57  ;;  %vm943_vm10 = vweird.f32 %v2354_v56  ;;  %v2527_v46 = vpop.permute.xlu0 %1138 }
 0x1ca   :  { %v915_v33 = vsel %vm2485_vm6, %v2338_v38, %v911_v0  ;;  %v955_v10 = vmul.f32 %v2390_v59, %v954_v44  ;;  %v2500_v62 = vmul.f32 %v890_v11, %v2273_v60  ;;  %v1106_v55 = vmul.f32 %v935_v47, %v2276_v1 }
 0x1cb   :  { %v1352_v19 = vmul.f32 -1.442695, %v2370_v50  ;;  %v1474_v17 = vpop.eup %1473  ;;  %vm942_vm8 = vweird.f32 %v2317_v36  ;;  %vm2504_vm9 = vcmp.eq.f32.partialorder %v946_v6, 8.507059e+37  ;;  %v949_v5 = vor.u32 1.1754944e-38, %v948_v21 }
 0x1cc   :  { %v2423_v12 = vadd.f32 1.0, %v1474_v17  ;;  %v1476_v14 = vpop.eup %1475  ;;  %vm2511_vm11 = vmor %vm942_vm8, %vm943_vm10  ;;  %v920_v36 = vsel %vm2444_vm7, %v919_v53, %v915_v33  ;;  %v956_v18 = vadd.f32 %v2390_v59, %v955_v10  ;;  %vm958_vm12 = vweird.f32 %v2390_v59 }
 0x1cd   :  { %1477 = vpow2.f32 %v1352_v19  ;;  %v793_v45 = vpop.f32.mrf.mxu1  ;;  %v2474_v19 = vadd.f32 1.0, %v1476_v14  ;;  %v945_v29 = vsel %vm2511_vm11, %v2354_v56, %v941_v15  ;;  %v1170_v22 = vmul.f32 %v2527_v46, %v1106_v55 }
 0x1ce   :  { %1479 = vrcp.f32 %v2397_v37  ;;  %v2463_v52 = vadd.f32 %v793_v45, %v2345_v16  ;;  %v961_v43 = vand.u32 2147483647, %v2331_v7  ;;  %v963_v56 = vand.u32 2147483648, %v2331_v7 }
 0x1cf   :  { %1481 = vrcp.f32 %v2408_v49  ;;  %vm957_vm13 = vweird.f32 %v2331_v7  ;;  %v2544_v54 = vmul.f32 %v920_v36, %v2280_v25  ;;  %v950_v57 = vsel %vm2504_vm9, %v949_v5, %v945_v29 }
 0x1d0   :  { %1483 = vpow2.f32 %v1351_v39  ;;  %v1353_v8 = vmul.f32 -1.442695, %v2463_v52  ;;  %v1168_v39 = vmul.f32 %v2497_v28, %v1104_v41  ;;  %v766_v1 = vpop.f32.mrf.mxu0  ;;  %vm2548_vm14 = vmor %vm957_vm13, %vm958_vm12  ;;  %v978_v11 = vand.u32 2147483648, %v2397_v37 }
 0x1d1   :  { %1485 = vrcp.f32 %v2423_v12  ;;  %v2532_v45 = vadd.f32 %v766_v1, %v2437_v2  ;;  %v960_v7 = vsel %vm2548_vm14, %v2390_v59, %v956_v18  ;;  %vm962_vm15 = vcmp.eq.f32.partialorder %v961_v43, 8.507059e+37 }
 0x1d2   :  { %v1182_v14 = vadd.f32 %v1168_v39, %v1166_v48  ;;  %v964_v21 = vor.u32 1.1754944e-38, %v963_v56  ;;  %v2564_v48 = vmul.f32 %v950_v57, %v2284_v35  ;;  %vm972_vm0 = vweird.f32 %v2397_v37 }
 0x1d3   :  { %v1478_v63 = vpop.eup %1477  ;;  %v1354_v61 = vmul.f32 -1.442695, %v2532_v45  ;;  %v991_v59 = vand.u32 2147483647, %v2408_v49  ;;  %v976_v10 = vand.u32 2147483647, %v2397_v37  ;;  %vm987_vm2 = vweird.f32 %v2408_v49 }
 0x1d4   :  { %v2469_v42 = vpop.eup %1479  ;;  %v2476_v16 = vadd.f32 1.0, %v1478_v63  ;;  %v2561_v6 = vadd.f32 %v1182_v14, %v1170_v22  ;;  %v965_v53 = vsel %vm962_vm15, %v964_v21, %v960_v7  ;;  %v993_v35 = vand.u32 2147483648, %v2408_v49 }
 0x1d5   :  { %v2478_v24 = vpop.eup %1481  ;;  %v968_v60 = vmul.f32 %v2469_v42, %v2397_v37  ;;  %vm973_vm1 = vweird.f32 %v2469_v42  ;;  %v1108_v5 = vmul.f32 %v965_v53, %v2291_v58  ;;  %vm2586_vm5 = vcmp.eq.f32.partialorder %v991_v59, 8.507059e+37  ;;  %v795_v14 = vpop.f32.mrf.mxu1 }
 0x1d6   :  { %v1484_v17 = vpop.eup %1483  ;;  %1487 = vrcp.f32 %v2476_v16  ;;  %v983_v27 = vmul.f32 %v2478_v24, %v2408_v49  ;;  %v1008_v36 = vand.u32 2147483648, %v2474_v19  ;;  %vm988_vm7 = vweird.f32 %v2478_v24  ;;  %vm2608_vm4 = vmor %vm972_vm0, %vm973_vm1 }
 0x1d7   :  { %v2508_v38 = vpop.eup %1485  ;;  %1489 = vrcp.f32 %v2474_v19  ;;  %v2525_v31 = vadd.f32 1.0, %v1484_v17  ;;  %v969_v32 = vsub.f32 1.0, %v968_v60  ;;  %vm2595_vm3 = vcmp.eq.f32.partialorder %v976_v10, 8.507059e+37  ;;  %vm2623_vm8 = vmor %vm987_vm2, %vm988_vm7 }
 0x1d8   :  { %1491 = vpow2.f32 %v1353_v8  ;;  %v1013_v34 = vmul.f32 %v2508_v38, %v2423_v12  ;;  %v984_v44 = vsub.f32 1.0, %v983_v27  ;;  %v2575_v8 = vor.u32 1.1754944e-38, %v978_v11 }
 0x1d9   :  { %1493 = vrcp.f32 %v2525_v31  ;;  %v970_v4 = vmul.f32 %v2469_v42, %v969_v32  ;;  %v994_v58 = vor.u32 1.1754944e-38, %v993_v35  ;;  %v1006_v43 = vand.u32 2147483647, %v2474_v19  ;;  %v2602_v32 = vpop.permute.xlu1 %1143 }
 0x1da   :  { %1495 = vpow2.f32 %v1354_v61  ;;  %v1014_v41 = vsub.f32 1.0, %v1013_v34  ;;  %v985_v15 = vmul.f32 %v2478_v24, %v984_v44  ;;  %v1023_v56 = vand.u32 2147483648, %v2423_v12 }
 0x1db   :  { %v971_v60 = vadd.f32 %v2469_v42, %v970_v4  ;;  %vm1002_vm6 = vweird.f32 %v2474_v19  ;;  %vm1018_vm10 = vweird.f32 %v2508_v38  ;;  %v1172_v44 = vmul.f32 %v2602_v32, %v1108_v5 }
 0x1dc   :  { %v2539_v13 = vpop.eup %1487  ;;  %v1015_v39 = vmul.f32 %v2508_v38, %v1014_v41  ;;  %v986_v29 = vadd.f32 %v2478_v24, %v985_v15  ;;  %v1009_v7 = vor.u32 1.1754944e-38, %v1008_v36  ;;  %vm1017_vm9 = vweird.f32 %v2423_v12 }
 0x1dd   :  { %v2553_v63 = vpop.eup %1489  ;;  %v1043_v25 = vmul.f32 %v2539_v13, %v2476_v16  ;;  %v2629_v11 = vadd.f32 %v795_v14, %v2437_v2  ;;  %v975_v21 = vsel %vm2608_vm4, %v2469_v42, %v971_v60  ;;  %vm2641_vm11 = vmor %vm1017_vm9, %vm1018_vm10  ;;  %vm1048_vm12 = vweird.f32 %v2539_v13 }
 0x1de   :  { %v1492_v47 = vpop.eup %1491  ;;  %v998_v17 = vmul.f32 %v2553_v63, %v2474_v19  ;;  %v1016_v57 = vadd.f32 %v2508_v38, %v1015_v39  ;;  %v990_v49 = vsel %vm2623_vm8, %v2478_v24, %v986_v29  ;;  %v1024_v53 = vor.u32 1.1754944e-38, %v1023_v56 }
 0x1df   :  { %v2572_v33 = vadd.f32 1.0, %v1492_v47  ;;  %v1044_v55 = vsub.f32 1.0, %v1043_v25  ;;  %v2578_v30 = vpop.eup %1493  ;;  %v1021_v47 = vand.u32 2147483647, %v2423_v12  ;;  %v1355_v42 = vmul.f32 -1.442695, %v2629_v11 }
 0x1e0   :  { %v1496_v9 = vpop.eup %1495  ;;  %v999_v27 = vsub.f32 1.0, %v998_v17  ;;  %v1028_v0 = vmul.f32 %v2578_v30, %v2525_v31  ;;  %v1020_v24 = vsel %vm2641_vm11, %v2508_v38, %v1016_v57  ;;  %v1053_v12 = vand.u32 2147483648, %v2476_v16 }
 0x1e1   :  { %1497 = vrcp.f32 %v2572_v33  ;;  %v2593_v18 = vadd.f32 1.0, %v1496_v9  ;;  %v1045_v34 = vmul.f32 %v2539_v13, %v1044_v55  ;;  %v995_v17 = vsel %vm2586_vm5, %v994_v58, %v990_v49 }
 0x1e2   :  { %v1000_v41 = vmul.f32 %v2553_v63, %v999_v27  ;;  %v1029_v15 = vsub.f32 1.0, %v1028_v0  ;;  %vm2656_vm13 = vcmp.eq.f32.partialorder %v1006_v43, 8.507059e+37  ;;  %vm1047_vm14 = vweird.f32 %v2476_v16 }
 0x1e3   :  { %1499 = vrcp.f32 %v2593_v18  ;;  %v1046_v2 = vadd.f32 %v2539_v13, %v1045_v34  ;;  %v1051_v35 = vand.u32 2147483647, %v2476_v16  ;;  %v1184_v39 = vadd.f32 %v2561_v6, %v1172_v44  ;;  %vm2667_vm1 = vmor %vm1047_vm14, %vm1048_vm12  ;;  %v2675_v6 = vpop.permute.xlu2 %1148 }
 0x1e4   :  { %1501 = vpow2.f32 %v1355_v42  ;;  %v1001_v38 = vadd.f32 %v2553_v63, %v1000_v41  ;;  %vm1003_vm15 = vweird.f32 %v2553_v63  ;;  %vm1022_vm0 = vcmp.eq.f32.partialorder %v1021_v47, 8.507059e+37 }
 0x1e5   :  { %v1025_v5 = vsel %vm1022_vm0, %v1024_v53, %v1020_v24  ;;  %v1050_v16 = vsel %vm2667_vm1, %v2539_v13, %v1046_v2  ;;  %v980_v36 = vsel %vm2595_vm3, %v2575_v8, %v975_v21  ;;  %v1110_v29 = vmul.f32 %v995_v17, %v2311_v20  ;;  %vm2684_vm2 = vmor %vm1002_vm6, %vm1003_vm15 }
 0x1e6   :  { %v1030_v27 = vmul.f32 %v2578_v30, %v1029_v15  ;;  %v1054_v58 = vor.u32 1.1754944e-38, %v1053_v12  ;;  %vm1032_vm5 = vweird.f32 %v2525_v31  ;;  %v1036_v13 = vand.u32 2147483647, %v2525_v31 }
 0x1e7   :  { %v2631_v25 = vpop.eup %1497  ;;  %vm1052_vm7 = vcmp.eq.f32.partialorder %v1051_v35, 8.507059e+37  ;;  %v1005_v8 = vsel %vm2684_vm2, %v2553_v63, %v1001_v38  ;;  %v1112_v20 = vmul.f32 %v1025_v5, %v2326_v3  ;;  %v1083_v34 = vand.u32 2147483648, %v2593_v18  ;;  %v1154_v63 = vpop.permute.xlu0 %1153 }
 0x1e8   :  { %v1058_v59 = vmul.f32 %v2631_v25, %v2572_v33  ;;  %v1055_v22 = vsel %vm1052_vm7, %v1054_v58, %v1050_v16  ;;  %v1081_v57 = vand.u32 2147483647, %v2593_v18  ;;  %v1174_v0 = vmul.f32 %v2675_v6, %v1110_v29 }
 0x1e9   :  { %v1500_v55 = vpop.eup %1499  ;;  %v1031_v44 = vadd.f32 %v2578_v30, %v1030_v27  ;;  %vm1033_vm4 = vweird.f32 %v2578_v30  ;;  %v1038_v3 = vand.u32 2147483648, %v2525_v31  ;;  %v1114_v21 = vmul.f32 %v1055_v22, %v2370_v50 }
 0x1ea   :  { %v1059_v60 = vsub.f32 1.0, %v1058_v59  ;;  %v1073_v1 = vmul.f32 %v1500_v55, %v2593_v18  ;;  %v1502_v19 = vpop.eup %1501  ;;  %vm1078_vm3 = vweird.f32 %v1500_v55  ;;  %vm1077_vm6 = vweird.f32 %v2593_v18  ;;  %vm2710_vm8 = vmor %vm1032_vm5, %vm1033_vm4  ;;  %v1159_v18 = vpop.permute.xlu1 %1158 }
 0x1eb   :  { %v2700_v37 = vadd.f32 1.0, %v1502_v19  ;;  %v1010_v41 = vsel %vm2656_vm13, %v1009_v7, %v1005_v8  ;;  %v1176_v47 = vmul.f32 %v1154_v63, %v1112_v20  ;;  %vm1079_vm10 = vmor %vm1077_vm6, %vm1078_vm3  ;;  %v1084_v4 = vor.u32 1.1754944e-38, %v1083_v34  ;;  %v1164_v17 = vpop.permute.xlu2 %1163 }
 0x1ec   :  { %v1074_v56 = vsub.f32 1.0, %v1073_v1  ;;  %v1060_v14 = vmul.f32 %v2631_v25, %v1059_v60  ;;  %vm1063_vm9 = vweird.f32 %v2631_v25  ;;  %vm1082_vm11 = vcmp.eq.f32.partialorder %v1081_v57, 8.507059e+37 }
 0x1ed   :  { %1503 = vrcp.f32 %v2700_v37  ;;  %v1185_v42 = vadd.f32 %v1184_v39, %v1174_v0  ;;  %v1035_v7 = vsel %vm2710_vm8, %v2578_v30, %v1031_v44  ;;  %v1068_v24 = vand.u32 2147483648, %v2572_v33 }
 0x1ee   :  { %v1075_v61 = vmul.f32 %v1500_v55, %v1074_v56  ;;  %v1061_v59 = vadd.f32 %v2631_v25, %v1060_v14  ;;  %v1178_v31 = vmul.f32 %v1159_v18, %v1114_v21  ;;  %vm1062_vm12 = vweird.f32 %v2572_v33 }
 0x1ef   :  { %v1066_v15 = vand.u32 2147483647, %v2572_v33  ;;  %v1167_v10 = vmul.f32 %v2471_v51, %v2500_v62  ;;  %v1169_v35 = vmul.f32 %v2497_v28, %v2544_v54  ;;  %v1039_v30 = vor.u32 1.1754944e-38, %v1038_v3  ;;  %vm2730_vm13 = vmor %vm1062_vm12, %vm1063_vm9 }
 0x1f0   :  { %v1076_v49 = vadd.f32 %v1500_v55, %v1075_v61  ;;  %v1186_v38 = vadd.f32 %v1185_v42, %v1176_v47  ;;  %vm1037_vm14 = vcmp.eq.f32.partialorder %v1036_v13, 8.507059e+37  ;;  %v1171_v28 = vmul.f32 %v2527_v46, %v2564_v48  ;;  %v1212_v47 = vpop.permute.xlu0 %1211 }
 0x1f1   :  { %v1040_v62 = vsel %vm1037_vm14, %v1039_v30, %v1035_v7  ;;  %v1069_v54 = vor.u32 1.1754944e-38, %v1068_v24  ;;  %vm1067_vm15 = vcmp.eq.f32.partialorder %v1066_v15, 8.507059e+37  ;;  %v1195_v16 = vadd.f32 %v1169_v35, %v1167_v10 }
 0x1f2   :  { %v1080_v50 = vsel %vm1079_vm10, %v1500_v55, %v1076_v49  ;;  %v1109_v55 = vmul.f32 %v980_v36, %v2309_v23  ;;  %v1111_v23 = vmul.f32 %v1010_v41, %v2343_v40  ;;  %v1187_v9 = vadd.f32 %v1186_v38, %v1178_v31 }
 0x1f3   :  { %v1085_v53 = vsel %vm1082_vm11, %v1084_v4, %v1080_v50  ;;  %v1504_v51 = vpop.eup %1503  ;;  %v1113_v36 = vmul.f32 %v1040_v62, %v2380_v26  ;;  %v1196_v27 = vadd.f32 %v1195_v16, %v1171_v28  ;;  %v1098_v46 = vand.u32 2147483648, %v2700_v37 }
 0x1f4   :  { %v1116_v12 = vmul.f32 %v1085_v53, %v2532_v45  ;;  %v1065_v45 = vsel %vm2730_vm13, %v2631_v25, %v1061_v59  ;;  %v1088_v5 = vmul.f32 %v1504_v51, %v2700_v37  ;;  %v1173_v60 = vmul.f32 %v2602_v32, %v1109_v55 }
 0x1f5   :  { %v1070_v1 = vsel %vm1067_vm15, %v1069_v54, %v1065_v45  ;;  %v1175_v58 = vmul.f32 %v2675_v6, %v1111_v23  ;;  %vm1093_vm0 = vweird.f32 %v1504_v51  ;;  %v1096_v43 = vand.u32 2147483647, %v2700_v37 }
 0x1f6   :  { %v1180_v33 = vmul.f32 %v1164_v17, %v1116_v12  ;;  %v1089_v29 = vsub.f32 1.0, %v1088_v5  ;;  %v1115_v40 = vmul.f32 %v1070_v1, %v2463_v52  ;;  %v1197_v13 = vadd.f32 %v1196_v27, %v1173_v60 }
 0x1f7   :  { %v1177_v56 = vmul.f32 %v1154_v63, %v1113_v36  ;;  %vm1092_vm1 = vweird.f32 %v2700_v37  ;;  %v1099_v26 = vor.u32 1.1754944e-38, %v1098_v46  ;;  %vm1097_vm5 = vcmp.eq.f32.partialorder %v1096_v43, 8.507059e+37 }
 0x1f8   :  { %v1188_v25 = vadd.f32 %v1187_v9, %v1180_v33  ;;  %v1090_v48 = vmul.f32 %v1504_v51, %v1089_v29  ;;  %vm1094_vm2 = vmor %vm1092_vm1, %vm1093_vm0  ;;  %v1198_v20 = vadd.f32 %v1197_v13, %v1175_v58  ;;  %v1179_v22 = vmul.f32 %v1159_v18, %v1115_v40 }
 0x1f9   :  { %v1214_v2 = vperm.slane %v1212_v47, 0  ;;  %v1223_v18 = vlaneseq  ;;  %vm1220_vm7 = vcmask 1040384  }
 0x1fa   :  { %v1189_v8 = vrot.slane %v1188_v25, 4  ;;  %v1091_v32 = vadd.f32 %v1504_v51, %v1090_v48  ;;  %v1199_v19 = vadd.f32 %v1198_v20, %v1177_v56 }
 0x1fb   :  { %vm1225_vm3 = vcmp.lt.s32.totalorder %v1223_v18, 256 }
 0x1fc   :  { %v1095_v34 = vsel %vm1094_vm2, %v1504_v51, %v1091_v32  ;;  %v1190_v14 = vadd.f32 %v1189_v8, %v1188_v25  ;;  %v1200_v61 = vadd.f32 %v1199_v19, %v1179_v22 }
 0x1fd   :  { %v1100_v6 = vsel %vm1097_vm5, %v1099_v26, %v1095_v34 }
 0x1fe   :  { %v1117_v52 = vmul.f32 %v1100_v6, %v2629_v11  ;;  %v1191_v0 = vrot.slane %v1190_v14, 2 }
 0x200   :  { %v1181_v57 = vmul.f32 %v1164_v17, %v1117_v52  ;;  %v1192_v3 = vadd.f32 %v1191_v0, %v1190_v14 }
 0x202   :  { %v1201_v44 = vadd.f32 %v1200_v61, %v1181_v57  ;;  %v1193_v37 = vrot.slane %v1192_v3, 1 }
 0x204   :  { %v1202_v63 = vrot.slane %v1201_v44, 4  ;;  %v1194_v59 = vadd.f32 %v1193_v37, %v1192_v3 }
 0x206   :  { %v1203_v21 = vadd.f32 %v1202_v63, %v1201_v44  ;;  %v1215_v11 = vadd.f32 %v1214_v2, %v1194_v59 }
 0x208   :  { %v1204_v49 = vrot.slane %v1203_v21, 2 }
 0x20a   :  { %v1205_v41 = vadd.f32 %v1204_v49, %v1203_v21 }
 0x20c   :  { %v1206_v4 = vrot.slane %v1205_v41, 1 }
 0x20e   :  { %v1207_v50 = vadd.f32 %v1206_v4, %v1205_v41 }
 0x210   :  { %v1216_v42 = vadd.f32 %v1214_v2, %v1207_v50 }
 0x212   :  { %v1219_v7 = vrot.slane %v1216_v42, 7 }
 0x214   :  { %v1221_v24 = vsel %vm1220_vm7, %v1215_v11, %v1219_v7 }
 0x215   :  { %1227 = vst.msk [vmem:[#allocation3] sm:$0x3] %vm1225_vm3, %v1221_v24 }
 0x216   :  { %1238 = dma.vmem_to_hbm [thread:$0]  %s1234_s15, 32, %s1236_s18, [#allocation4]  }
 0x217   :  { %1529 = dma.done.wait [#allocation4], 32  }
 0x218   :  { %1530 = vsyncadd [#allocation4], 4294967264 }
 0x219   :  { %1243 = vsyncpa [#allocation4], 1 }

// kernel: tpu_custom_call.1
= control target key start
LH: loop header
LB: loop body
LE: loop exit
PB: predicated region body
PF: predicated region fallthrough
CT: control target
= control target key end

     0   :  { %s2752_s0 = inlined_call_operand.vmem [shape: bf16[16,256], index: 0, kind: input, shape index: {}]   ;;  %s2753_s1 = inlined_call_operand.vmem [shape: bf16[8,256], index: 1, kind: input, shape index: {}]   ;;  %s2754_s2 = inlined_call_operand.vmem [shape: bf16[64,16], index: 2, kind: input, shape index: {}]   ;;  %s2755_s3 = inlined_call_operand.vmem [shape: bf16[64,8], index: 3, kind: input, shape index: {}]   ;;  %s2756_s4 = inlined_call_operand.vmem [shape: f32[64,1], index: 4, kind: input, shape index: {}]   ;;  %s2757_s5 = inlined_call_operand.vmem [shape: bf16[64,64], index: 5, kind: input, shape index: {}]   ;;  %s2758_s6 = inlined_call_operand.vmem [shape: f32[64,1], index: 6, kind: input, shape index: {}]   ;;  %s2759_s7 = inlined_call_operand.vmem [shape: f32[64,1], index: 7, kind: input, shape index: {}]   ;;  %s2760_s8 = inlined_call_operand.<no memory space> [shape: f32[1,1], index: 8, kind: input, shape index: {}]   ;;  %s2761_s9 = inlined_call_operand.hbm [shape: f32[1,256], index: 9, kind: output, shape index: {}]  }
   0x1   :  { %v14_v0 = vstv %s2760_s8 }
   0x2   :  { %15 = vst [vmem:[#allocation2] sm:$0x1] %v14_v0 }
   0x3   :  { %v54_v1 = vld [vmem:[%s2753_s1] sm:$0xff]  ;;  %v1288_v5 = vld [vmem:[%s2752_s0 + $0x8] sm:$0xf0]  ;;  %vm93_vm0 = vcmask 1043456   ;;  %v1361_v7 = vld [vmem:[%s2752_s0 + $0x4] sm:$0xf0] }
   0x4   :  { %v76_v2 = vunpack.c.l.b16 %v54_v1  ;;  %v77_v3 = vunpack.c.h.b16 %v54_v1  ;;  %v1360_v4 = vld [vmem:[%s2752_s0 + $0x4] sm:$0xf]  ;;  %v1286_v6 = vld [vmem:[%s2752_s0] sm:$0xf] }
   0x5   :  { %16 = vsyncpa [#allocation4], 0  ;;  %v1291_v10 = vor.u32 %v1360_v4, %v1288_v5  ;;  %v1287_v11 = vor.u32 %v1361_v7, %v1286_v6  ;;  %v1364_v14 = vld [vmem:[%s2755_s3 + $0x10] sm:$0xff]  ;;  %vm80_vm1 = vcmask 64512   ;;  %v1362_v16 = vld [vmem:[%s2755_s3] sm:$0xff]  ;;  %v1531_v17 = vmov 0  }
   0x6   :  { %v78_v8 = vpack.c.b16 %v76_v2, %v76_v2  ;;  %v79_v9 = vpack.c.b16 %v77_v3, %v77_v3  ;;  %v265_v15 = vld [vmem:[%s2756_s4 + $0x30] sm:$0xff]  ;;  %1374 = vset.pattern.permute.xlu0 %v1531_v17  ;;  %1375 = vset.pattern.permute.xlu1 %v1531_v17  ;;  %v263_v18 = vld [vmem:[%s2756_s4 + $0x20] sm:$0xff]  ;;  %v266_v19 = vld [vmem:[%s2756_s4 + $0x38] sm:$0xff]  ;;  %vm188_vm2 = vcmask 130048   ;;  %s1235_s18 = sshll.u32 %s2761_s9, 4  ;;  %s1236_s18 = int_to_ptr.hbm [resolvable:$true] %s1235_s18 }
   0x7   :  { %299 = vperm.xlu0 %1374, %v265_v15   ;;  %289 = vperm.xlu1 %1375, %v263_v18   ;;  %v1365_v20 = vld [vmem:[%s2755_s3 + $0x18] sm:$0xff]  ;;  %v264_v21 = vld [vmem:[%s2756_s4 + $0x28] sm:$0xff]  ;;  %v259_v22 = vld [vmem:[%s2756_s4] sm:$0xff] }
   0x8   :  { %v95_v12 = vsel %vm93_vm0, %v78_v8, 0  ;;  %v98_v13 = vsel %vm93_vm0, %v79_v9, 0  ;;  %1376 = vset.pattern.permute.xlu2 %v1531_v17  ;;  %v1363_v23 = vld [vmem:[%s2755_s3 + $0x8] sm:$0xff]  ;;  %v1356_v26 = vld [vmem:[%s2754_s2] sm:$0xff]  ;;  %v661_v28 = vld [vmem:[%s2758_s6 + $0x10] sm:$0xff] }
   0x9   :  { %1370 = vmatpush.bf16.msra.mxu2 %v95_v12  ;;  %1371 = vmatpush.bf16.msra.mxu3 %v98_v13  ;;  %v260_v24 = vld [vmem:[%s2756_s4 + $0x8] sm:$0xff]  ;;  %v663_v27 = vld [vmem:[%s2758_s6 + $0x20] sm:$0xff]  ;;  %v666_v29 = vld [vmem:[%s2758_s6 + $0x38] sm:$0xff] }
   0xa   :  { %107 = vmatpush.bf16.msra.mxu0 %v95_v12  ;;  %136 = vmatpush.bf16.msra.mxu1 %v98_v13  ;;  %v660_v25 = vld [vmem:[%s2758_s6 + $0x8] sm:$0xff]  ;;  %v261_v30 = vld [vmem:[%s2756_s4 + $0x10] sm:$0xff]  ;;  %v262_v34 = vld [vmem:[%s2756_s4 + $0x18] sm:$0xff] }
   0xb   :  { %279 = vperm.xlu2 %1376, %v261_v30   ;;  %v1357_v31 = vld [vmem:[%s2754_s2 + $0x8] sm:$0xff]  ;;  %v1120_v33 = vld [vmem:[%s2759_s7 + $0x10] sm:$0xff]  ;;  %v1118_v35 = vld [vmem:[%s2759_s7] sm:$0xff] }
   0xc   :  { %1262 = vmatmul.msk.bf16.vlgmr.msra.gmra.mxu2 %vm80_vm1, %v1364_v14  ;;  %1266 = vmatmul.msk.bf16.vlgmr.msra.gmra.mxu3 %vm80_vm1, %v1364_v14  ;;  %v664_v32 = vld [vmem:[%s2758_s6 + $0x28] sm:$0xff]  ;;  %v659_v37 = vld [vmem:[%s2758_s6] sm:$0xff]  ;;  %v1358_v38 = vld [vmem:[%s2754_s2 + $0x10] sm:$0xff] }
   0xd   :  { %237 = vmatpush.bf16.msrb.mxu3 %v1291_v10  ;;  %208 = vmatpush.bf16.msrb.mxu2 %v1287_v11  ;;  %v1123_v36 = vld [vmem:[%s2759_s7 + $0x28] sm:$0xff]  ;;  %v1121_v39 = vld [vmem:[%s2759_s7 + $0x18] sm:$0xff]  ;;  %v1208_v40 = vld [vmem:[#allocation2] sm:$0x1] }
   0xe   :  { %1260 = vmatmul.msk.bf16.vlgmr.msra.gmra.mxu0 %vm80_vm1, %v1362_v16  ;;  %1264 = vmatmul.msk.bf16.vlgmr.msra.gmra.mxu1 %vm80_vm1, %v1362_v16  ;;  %v662_v41 = vld [vmem:[%s2758_s6 + $0x18] sm:$0xff]  ;;  %v1124_v42 = vld [vmem:[%s2759_s7 + $0x30] sm:$0xff]  ;;  %v1119_v45 = vld [vmem:[%s2759_s7 + $0x8] sm:$0xff] }
   0xf   :  { %304 = vperm.xlu0 %1374, %v266_v19   ;;  %294 = vperm.xlu1 %1375, %v264_v21   ;;  %v665_v43 = vld [vmem:[%s2758_s6 + $0x30] sm:$0xff]  ;;  %v1359_v44 = vld [vmem:[%s2754_s2 + $0x18] sm:$0xff]  ;;  %v1122_v46 = vld [vmem:[%s2759_s7 + $0x20] sm:$0xff] }
  0x10   :  { %v1125_v47 = vld [vmem:[%s2759_s7 + $0x38] sm:$0xff] }
  0x13   :  { %284 = vperm.xlu2 %1376, %v262_v34  }
  0x17   :  { %269 = vperm.xlu0 %1374, %v259_v22   ;;  %274 = vperm.xlu1 %1375, %v260_v24  }
  0x1b   :  { %669 = vperm.xlu2 %1376, %v659_v37  }
  0x1c   :  { %1263 = vmatmul.msk.bf16.gmra.mxu2 %vm80_vm1, %v1365_v20  ;;  %1267 = vmatmul.msk.bf16.gmra.mxu3 %vm80_vm1, %v1365_v20 }
  0x1e   :  { %1261 = vmatmul.msk.bf16.gmra.mxu0 %vm80_vm1, %v1363_v23  ;;  %1265 = vmatmul.msk.bf16.gmra.mxu1 %vm80_vm1, %v1363_v23 }
  0x1f   :  { %674 = vperm.xlu0 %1374, %v660_v25   ;;  %679 = vperm.xlu1 %1375, %v661_v28  }
  0x23   :  { %684 = vperm.xlu2 %1376, %v662_v41  }
  0x27   :  { %689 = vperm.xlu0 %1374, %v663_v27   ;;  %694 = vperm.xlu1 %1375, %v664_v32  }
  0x2b   :  { %699 = vperm.xlu2 %1376, %v665_v43  }
  0x2c   :  { %1292 = vmatmul.msk.bf16.vlgmr.msrb.gmra.mxu2 %vm188_vm2, %v1356_v26  ;;  %1296 = vmatmul.msk.bf16.vlgmr.msrb.gmra.mxu3 %vm188_vm2, %v1356_v26 }
  0x2f   :  { %704 = vperm.xlu0 %1374, %v666_v29   ;;  %1128 = vperm.xlu1 %1375, %v1118_v35  }
  0x33   :  { %1133 = vperm.xlu2 %1376, %v1119_v45  }
  0x37   :  { %1138 = vperm.xlu0 %1374, %v1120_v33   ;;  %1143 = vperm.xlu1 %1375, %v1121_v39  }
  0x3b   :  { %1148 = vperm.xlu2 %1376, %v1122_v46  }
  0x3c   :  { %1293 = vmatmul.msk.bf16.gmra.mxu2 %vm188_vm2, %v1357_v31  ;;  %1297 = vmatmul.msk.bf16.gmra.mxu3 %vm188_vm2, %v1357_v31 }
  0x3f   :  { %1153 = vperm.xlu0 %1374, %v1123_v36   ;;  %1158 = vperm.xlu1 %1375, %v1124_v42  }
  0x43   :  { %1163 = vperm.xlu2 %1376, %v1125_v47  }
  0x47   :  { %1211 = vperm.xlu0 %1374, %v1208_v40  }
  0x4c   :  { %1294 = vmatmul.msk.bf16.gmra.mxu2 %vm188_vm2, %v1358_v38  ;;  %1298 = vmatmul.msk.bf16.gmra.mxu3 %vm188_vm2, %v1358_v38 }
  0x5c   :  { %1295 = vmatmul.msk.bf16.gmra.mxu2 %vm188_vm2, %v1359_v44  ;;  %1299 = vmatmul.msk.bf16.gmra.mxu3 %vm188_vm2, %v1359_v44 }
  0x65   :  { %v280_v9 = vpop.permute.xlu2 %279 }
  0x6d   :  { %v285_v33 = vpop.permute.xlu2 %284 }
  0x79   :  { %v1725_v54 = vpop.permute.xlu0 %299  ;;  %v1731_v59 = vpop.permute.xlu1 %289 }
  0x81   :  { %v1733_v62 = vpop.permute.xlu0 %304  ;;  %v1735_v3 = vpop.permute.xlu1 %294 }
  0x89   :  { %v270_v5 = vpop.permute.xlu0 %269  ;;  %v275_v18 = vpop.permute.xlu1 %274 }
  0x8b   :  { %v109_v55 = vpop.f32.mrf.mxu0  ;;  %v138_v58 = vpop.f32.mrf.mxu1 }
  0x8f   :  { %v1713_v48 = vpop.f32.mrf.mxu2  ;;  %v1715_v49 = vpop.f32.mrf.mxu3 }
  0x93   :  { %v111_v63 = vpop.f32.mrf.mxu0  ;;  %v140_v0 = vpop.f32.mrf.mxu1 }
  0x97   :  { %v1717_v50 = vpop.f32.mrf.mxu2  ;;  %v1719_v51 = vpop.f32.mrf.mxu3 }
  0x9b   :  { %v114_v6 = vpop.f32.mrf.mxu0  ;;  %v143_v7 = vpop.f32.mrf.mxu1 }
  0x9f   :  { %v1721_v52 = vpop.f32.mrf.mxu2  ;;  %v1723_v53 = vpop.f32.mrf.mxu3 }
  0xa3   :  { %v116_v25 = vpop.f32.mrf.mxu0  ;;  %v145_v27 = vpop.f32.mrf.mxu1 }
  0xa7   :  { %v1727_v56 = vpop.f32.mrf.mxu2  ;;  %v1729_v57 = vpop.f32.mrf.mxu3 }
  0xaf   :  { %v210_v60 = vpop.f32.mrf.mxu2  ;;  %v239_v61 = vpop.f32.mrf.mxu3 }
  0xb0   :  { %v211_v4 = vadd.f32 %v210_v60, %v109_v55  ;;  %v240_v12 = vadd.f32 %v239_v61, %v138_v58 }
  0xb2   :  { %v1737_v8 = vadd.f32 %v270_v5, %v211_v4  ;;  %v1744_v21 = vadd.f32 %v270_v5, %v240_v12 }
  0xb4   :  { %2765 = vst [vmem:[#allocation6_spill] sm:$0xff] %v1737_v8  ;;  %v1300_v15 = vmul.f32 -1.442695, %v1737_v8  ;;  %v1301_v30 = vmul.f32 -1.442695, %v1744_v21 }
  0xb5   :  { %2766 = vst [vmem:[#allocation7_spill] sm:$0xff] %v1744_v21 }
  0xb6   :  { %1377 = vpow2.f32 %v1300_v15 }
  0xb7   :  { %v212_v1 = vpop.f32.mrf.mxu2  ;;  %v241_v2 = vpop.f32.mrf.mxu3 }
  0xb8   :  { %v213_v16 = vadd.f32 %v212_v1, %v111_v63  ;;  %v242_v17 = vadd.f32 %v241_v2, %v140_v0 }
  0xba   :  { %v1748_v24 = vadd.f32 %v275_v18, %v213_v16  ;;  %v1750_v26 = vadd.f32 %v275_v18, %v242_v17 }
  0xbc   :  { %2767 = vst [vmem:[#allocation8_spill] sm:$0xff] %v1750_v26  ;;  %v1302_v32 = vmul.f32 -1.442695, %v1748_v24  ;;  %v1303_v35 = vmul.f32 -1.442695, %v1750_v26  ;;  %v1378_v37 = vpop.eup %1377 }
  0xbd   :  { %v1762_v43 = vadd.f32 1.0, %v1378_v37 }
  0xbf   :  { %v215_v10 = vpop.f32.mrf.mxu2  ;;  %v244_v11 = vpop.f32.mrf.mxu3 }
  0xc0   :  { %v216_v13 = vadd.f32 %v215_v10, %v114_v6  ;;  %v245_v14 = vadd.f32 %v244_v11, %v143_v7 }
  0xc2   :  { %v1740_v19 = vadd.f32 %v280_v9, %v216_v13  ;;  %v1742_v20 = vadd.f32 %v280_v9, %v245_v14 }
  0xc4   :  { %v1304_v22 = vmul.f32 -1.442695, %v1740_v19  ;;  %v1305_v23 = vmul.f32 -1.442695, %v1742_v20 }
  0xc6   :  { %1379 = vpow2.f32 %v1304_v22 }
  0xc7   :  { %v217_v28 = vpop.f32.mrf.mxu2  ;;  %v246_v29 = vpop.f32.mrf.mxu3  ;;  %1381 = vpow2.f32 %v1305_v23 }
  0xc8   :  { %v218_v31 = vadd.f32 %v217_v28, %v116_v25  ;;  %v247_v34 = vadd.f32 %v246_v29, %v145_v27  ;;  %1383 = vpow2.f32 %v1301_v30 }
  0xc9   :  { %1385 = vpow2.f32 %v1302_v32 }
  0xca   :  { %v1755_v36 = vadd.f32 %v285_v33, %v218_v31  ;;  %v1760_v41 = vadd.f32 %v285_v33, %v247_v34  ;;  %1387 = vpow2.f32 %v1303_v35 }
  0xcc   :  { %v1380_v38 = vpop.eup %1379  ;;  %v1306_v39 = vmul.f32 -1.442695, %v1755_v36  ;;  %v1307_v58 = vmul.f32 -1.442695, %v1760_v41 }
  0xcd   :  { %v1758_v40 = vadd.f32 1.0, %v1380_v38  ;;  %v1382_v42 = vpop.eup %1381 }
  0xce   :  { %v1765_v46 = vadd.f32 1.0, %v1382_v42  ;;  %v1384_v60 = vpop.eup %1383 }
  0xcf   :  { %1389 = vrcp.f32 %v1758_v40  ;;  %v220_v44 = vpop.f32.mrf.mxu2  ;;  %v249_v45 = vpop.f32.mrf.mxu3  ;;  %v1782_v4 = vadd.f32 1.0, %v1384_v60  ;;  %vm452_vm3 = vweird.f32 %v1758_v40  ;;  %v458_v25 = vand.u32 2147483648, %v1758_v40 }
  0xd0   :  { %1391 = vpow2.f32 %v1306_v39  ;;  %v221_v47 = vadd.f32 %v220_v44, %v1713_v48  ;;  %v250_v55 = vadd.f32 %v249_v45, %v1715_v49  ;;  %v1386_v0 = vpop.eup %1385  ;;  %v456_v31 = vand.u32 2147483647, %v1758_v40 }
  0xd1   :  { %1393 = vrcp.f32 %v1762_v43  ;;  %v1388_v1 = vpop.eup %1387  ;;  %v1784_v6 = vadd.f32 1.0, %v1386_v0  ;;  %v473_v32 = vand.u32 2147483648, %v1765_v46  ;;  %vm467_vm6 = vweird.f32 %v1765_v46 }
  0xd2   :  { %v1771_v61 = vadd.f32 %v1731_v59, %v221_v47  ;;  %v1774_v63 = vadd.f32 %v1731_v59, %v250_v55  ;;  %1395 = vrcp.f32 %v1765_v46  ;;  %v1788_v7 = vadd.f32 1.0, %v1388_v1 }
  0xd3   :  { %1397 = vpow2.f32 %v1307_v58  ;;  %v471_v47 = vand.u32 2147483647, %v1765_v46  ;;  %v459_v58 = vor.u32 1.1754944e-38, %v458_v25  ;;  %vm1845_vm5 = vcmp.eq.f32.partialorder %v456_v31, 8.507059e+37 }
  0xd4   :  { %v1308_v2 = vmul.f32 -1.442695, %v1771_v61  ;;  %v1309_v48 = vmul.f32 -1.442695, %v1774_v63 }
  0xd5   :  { %v1780_v49 = vpop.eup %1389  ;;  %vm1895_vm10 = vcmp.eq.f32.partialorder %v471_v47, 8.507059e+37 }
  0xd6   :  { %v1392_v5 = vpop.eup %1391  ;;  %1399 = vpow2.f32 %v1308_v2  ;;  %v448_v59 = vmul.f32 %v1780_v49, %v1758_v40  ;;  %vm453_vm4 = vweird.f32 %v1780_v49 }
  0xd7   :  { %v222_v9 = vpop.f32.mrf.mxu2  ;;  %v251_v10 = vpop.f32.mrf.mxu3  ;;  %1401 = vpow2.f32 %v1309_v48  ;;  %v1795_v14 = vadd.f32 1.0, %v1392_v5  ;;  %vm1870_vm8 = vmor %vm452_vm3, %vm453_vm4 }
  0xd8   :  { %v223_v11 = vadd.f32 %v222_v9, %v1717_v50  ;;  %v252_v12 = vadd.f32 %v251_v10, %v1719_v51  ;;  %v1792_v13 = vpop.eup %1393  ;;  %1403 = vrcp.f32 %v1782_v4  ;;  %v449_v18 = vsub.f32 1.0, %v448_v59 }
  0xd9   :  { %v1797_v15 = vpop.eup %1395  ;;  %1405 = vrcp.f32 %v1784_v6  ;;  %v388_v28 = vmul.f32 %v1792_v13, %v1762_v43  ;;  %v488_v39 = vand.u32 2147483648, %v1795_v14  ;;  %v486_v5 = vand.u32 2147483647, %v1795_v14 }
  0xda   :  { %v1801_v16 = vadd.f32 %v1735_v3, %v223_v11  ;;  %v1804_v17 = vadd.f32 %v1735_v3, %v252_v12  ;;  %v1398_v50 = vpop.eup %1397  ;;  %1407 = vrcp.f32 %v1788_v7  ;;  %v463_v3 = vmul.f32 %v1797_v15, %v1765_v46 }
  0xdb   :  { %1409 = vrcp.f32 %v1795_v14  ;;  %v450_v30 = vmul.f32 %v1780_v49, %v449_v18  ;;  %v1823_v34 = vadd.f32 1.0, %v1398_v50  ;;  %v389_v0 = vsub.f32 1.0, %v388_v28 }
  0xdc   :  { %v1400_v51 = vpop.eup %1399  ;;  %v1310_v22 = vmul.f32 -1.442695, %v1801_v16  ;;  %v1311_v23 = vmul.f32 -1.442695, %v1804_v17  ;;  %v464_v60 = vsub.f32 1.0, %v463_v3  ;;  %v1853_v59 = vor.u32 1.1754944e-38, %v488_v39 }
  0xdd   :  { %v1812_v27 = vadd.f32 1.0, %v1400_v51  ;;  %v1402_v29 = vpop.eup %1401  ;;  %v451_v48 = vadd.f32 %v1780_v49, %v450_v30  ;;  %vm468_vm7 = vweird.f32 %v1797_v15  ;;  %v1877_v25 = vmul.f32 %v1792_v13, %v389_v0 }
  0xde   :  { %1411 = vpow2.f32 %v1310_v22  ;;  %v1821_v33 = vpop.eup %1403  ;;  %v1826_v35 = vadd.f32 1.0, %v1402_v29  ;;  %v465_v22 = vmul.f32 %v1797_v15, %v464_v60  ;;  %vm482_vm14 = vweird.f32 %v1795_v14  ;;  %vm1931_vm15 = vmor %vm467_vm6, %vm468_vm7 }
  0xdf   :  { %1413 = vrcp.f32 %v1812_v27  ;;  %v225_v37 = vpop.f32.mrf.mxu2  ;;  %v254_v38 = vpop.f32.mrf.mxu3  ;;  %v516_v29 = vand.u32 2147483647, %v1812_v27  ;;  %v455_v40 = vsel %vm1870_vm8, %v1780_v49, %v451_v48  ;;  %vm512_vm9 = vweird.f32 %v1812_v27 }
  0xe0   :  { %v1829_v42 = vpop.eup %1405  ;;  %1415 = vpow2.f32 %v1311_v23  ;;  %v226_v44 = vadd.f32 %v225_v37, %v1721_v52  ;;  %v255_v45 = vadd.f32 %v254_v38, %v1723_v53  ;;  %v518_v0 = vand.u32 2147483648, %v1812_v27 }
  0xe1   :  { %v1834_v55 = vpop.eup %1407  ;;  %1417 = vrcp.f32 %v1826_v35  ;;  %vm1914_vm11 = vcmp.eq.f32.partialorder %v516_v29, 8.507059e+37  ;;  %v531_v51 = vand.u32 2147483647, %v1826_v35  ;;  %vm527_vm0 = vweird.f32 %v1826_v35 }
  0xe2   :  { %v1838_v1 = vadd.f32 %v1725_v54, %v226_v44  ;;  %v1841_v2 = vadd.f32 %v1725_v54, %v255_v45  ;;  %v1849_v53 = vpop.eup %1409  ;;  %1419 = vrcp.f32 %v1823_v34  ;;  %v1856_v54 = vor.u32 1.1754944e-38, %v473_v32 }
  0xe3   :  { %v478_v38 = vmul.f32 %v1849_v53, %v1795_v14  ;;  %vm483_vm12 = vweird.f32 %v1849_v53  ;;  %vm1974_vm3 = vcmp.eq.f32.partialorder %v486_v5, 8.507059e+37  ;;  %vm1994_vm6 = vcmp.eq.f32.partialorder %v531_v51, 8.507059e+37 }
  0xe4   :  { %v1412_v9 = vpop.eup %1411  ;;  %v1312_v10 = vmul.f32 -1.442695, %v1838_v1  ;;  %v1313_v11 = vmul.f32 -1.442695, %v1841_v2 }
  0xe5   :  { %v1862_v18 = vpop.eup %1413  ;;  %v1864_v50 = vadd.f32 1.0, %v1412_v9  ;;  %v533_v9 = vand.u32 2147483648, %v1826_v35 }
  0xe6   :  { %v1416_v3 = vpop.eup %1415  ;;  %1421 = vpow2.f32 %v1312_v10  ;;  %v508_v28 = vmul.f32 %v1862_v18, %v1812_v27  ;;  %v466_v10 = vadd.f32 %v1797_v15, %v465_v22  ;;  %vm513_vm13 = vweird.f32 %v1862_v18 }
  0xe7   :  { %v1885_v30 = vpop.eup %1417  ;;  %1423 = vrcp.f32 %v1864_v50  ;;  %v1888_v31 = vadd.f32 1.0, %v1416_v3  ;;  %v227_v32 = vpop.f32.mrf.mxu2  ;;  %v460_v22 = vsel %vm1845_vm5, %v459_v58, %v455_v40  ;;  %v479_v3 = vsub.f32 1.0, %v478_v38  ;;  %vm1956_vm1 = vmor %vm512_vm9, %vm513_vm13 }
  0xe8   :  { %v256_v37 = vpop.f32.mrf.mxu3  ;;  %1425 = vpow2.f32 %v1313_v11  ;;  %v228_v39 = vadd.f32 %v227_v32, %v1727_v56  ;;  %v509_v45 = vsub.f32 1.0, %v508_v28  ;;  %v1899_v60 = vpop.eup %1419  ;;  %v523_v48 = vmul.f32 %v1885_v30, %v1826_v35 }
  0xe9   :  { %v257_v44 = vadd.f32 %v256_v37, %v1729_v57  ;;  %1427 = vrcp.f32 %v1888_v31  ;;  %v519_v40 = vor.u32 1.1754944e-38, %v518_v0  ;;  %v1940_v38 = vor.u32 1.1754944e-38, %v533_v9 }
  0xea   :  { %v1908_v56 = vadd.f32 %v1733_v62, %v228_v39  ;;  %v510_v47 = vmul.f32 %v1862_v18, %v509_v45  ;;  %v524_v37 = vsub.f32 1.0, %v523_v48  ;;  %v546_v48 = vand.u32 2147483647, %v1864_v50 }
  0xeb   :  { %v1911_v57 = vadd.f32 %v1733_v62, %v257_v44  ;;  %v470_v44 = vsel %vm1931_vm15, %v1797_v15, %v466_v10  ;;  %v480_v15 = vmul.f32 %v1849_v53, %v479_v3  ;;  %v1962_v10 = vmul.f32 %v460_v22, %v1740_v19 }
  0xec   :  { %v1422_v28 = vpop.eup %1421  ;;  %v1314_v62 = vmul.f32 -1.442695, %v1908_v56  ;;  %v511_v29 = vadd.f32 %v1862_v18, %v510_v47  ;;  %v548_v47 = vand.u32 2147483648, %v1864_v50  ;;  %vm542_vm2 = vweird.f32 %v1864_v50 }
  0xed   :  { %v1315_v32 = vmul.f32 -1.442695, %v1911_v57  ;;  %v1935_v58 = vpop.eup %1423  ;;  %v1937_v52 = vadd.f32 1.0, %v1422_v28  ;;  %v1981_v19 = vsel %vm1895_vm10, %v1856_v54, %v470_v44  ;;  %vm1989_vm4 = vcmp.eq.f32.partialorder %v546_v48, 8.507059e+37  ;;  %vm2020_vm10 = vmor %vm482_vm14, %vm483_vm12 }
  0xee   :  { %v1426_v45 = vpop.eup %1425  ;;  %1429 = vpow2.f32 %v1314_v62  ;;  %v538_v46 = vmul.f32 %v1935_v58, %v1864_v50  ;;  %v515_v62 = vsel %vm1956_vm1, %v1862_v18, %v511_v29  ;;  %v1985_v18 = vmul.f32 %v1899_v60, %v1823_v34 }
  0xef   :  { %1431 = vrcp.f32 %v1937_v52  ;;  %v1950_v0 = vadd.f32 1.0, %v1426_v45  ;;  %v1964_v28 = vpop.eup %1427  ;;  %v525_v45 = vmul.f32 %v1885_v30, %v524_v37  ;;  %v578_v22 = vand.u32 2147483648, %v1937_v52 }
  0xf0   :  { %1433 = vpow2.f32 %v1315_v32  ;;  %v539_v39 = vsub.f32 1.0, %v538_v46  ;;  %v549_v5 = vor.u32 1.1754944e-38, %v548_v47  ;;  %vm528_vm5 = vweird.f32 %v1885_v30 }
  0xf1   :  { %1435 = vrcp.f32 %v1950_v0  ;;  %v520_v54 = vsel %vm1914_vm11, %v519_v40, %v515_v62  ;;  %v553_v49 = vmul.f32 %v1964_v28, %v1888_v31  ;;  %v561_v37 = vand.u32 2147483647, %v1888_v31  ;;  %vm2037_vm12 = vmor %vm527_vm0, %vm528_vm5 }
  0xf2   :  { %v540_v3 = vmul.f32 %v1935_v58, %v539_v39  ;;  %v481_v44 = vadd.f32 %v1849_v53, %v480_v15  ;;  %vm543_vm7 = vweird.f32 %v1935_v58  ;;  %v526_v51 = vadd.f32 %v1885_v30, %v525_v45 }
  0xf3   :  { %vm557_vm8 = vweird.f32 %v1888_v31  ;;  %v563_v47 = vand.u32 2147483648, %v1888_v31  ;;  %vm572_vm9 = vweird.f32 %v1937_v52  ;;  %v576_v9 = vand.u32 2147483647, %v1937_v52  ;;  %vm2050_vm13 = vmor %vm542_vm2, %vm543_vm7 }
  0xf4   :  { %v1430_v46 = vpop.eup %1429  ;;  %v541_v48 = vadd.f32 %v1935_v58, %v540_v3  ;;  %v593_v15 = vand.u32 2147483648, %v1950_v0  ;;  %v2026_v3 = vor.u32 1.1754944e-38, %v578_v22  ;;  %vm587_vm11 = vweird.f32 %v1950_v0 }
  0xf5   :  { %v2009_v11 = vpop.eup %1431  ;;  %v2011_v40 = vadd.f32 1.0, %v1430_v46  ;;  %v591_v46 = vand.u32 2147483647, %v1950_v0  ;;  %v2031_v23 = vmul.f32 %v520_v54, %v1771_v61  ;;  %v554_v54 = vsub.f32 1.0, %v553_v49 }
  0xf6   :  { %v1434_v39 = vpop.eup %1433  ;;  %v568_v45 = vmul.f32 %v2009_v11, %v1937_v52  ;;  %v485_v35 = vsel %vm2020_vm10, %v1849_v53, %v481_v44  ;;  %v530_v50 = vsel %vm2037_vm12, %v1885_v30, %v526_v51  ;;  %vm2065_vm14 = vcmp.eq.f32.partialorder %v561_v37, 8.507059e+37 }
  0xf7   :  { %v2041_v12 = vpop.eup %1435  ;;  %1437 = vrcp.f32 %v2011_v40  ;;  %v2044_v22 = vadd.f32 1.0, %v1434_v39  ;;  %v545_v39 = vsel %vm2050_vm13, %v1935_v58, %v541_v48  ;;  %v594_v49 = vor.u32 1.1754944e-38, %v593_v15 }
  0xf8   :  { %v569_v26 = vsub.f32 1.0, %v568_v45  ;;  %v583_v21 = vmul.f32 %v2041_v12, %v1950_v0  ;;  %vm558_vm15 = vweird.f32 %v1964_v28  ;;  %v564_v53 = vor.u32 1.1754944e-38, %v563_v47 }
  0xf9   :  { %1439 = vrcp.f32 %v2044_v22  ;;  %vm2072_vm0 = vcmp.eq.f32.partialorder %v576_v9, 8.507059e+37  ;;  %v606_v58 = vand.u32 2147483647, %v2011_v40  ;;  %vm2077_vm1 = vcmp.eq.f32.partialorder %v591_v46, 8.507059e+37 }
  0xfa   :  { %v570_v44 = vmul.f32 %v2009_v11, %v569_v26  ;;  %v584_v48 = vsub.f32 1.0, %v583_v21  ;;  %v490_v37 = vsel %vm1974_vm3, %v1853_v59, %v485_v35  ;;  %vm573_vm2 = vweird.f32 %v2009_v11 }
  0xfb   :  { %v550_v26 = vsel %vm1989_vm4, %v549_v5, %v545_v39  ;;  %v535_v51 = vsel %vm1994_vm6, %v1940_v38, %v530_v50  ;;  %v555_v47 = vmul.f32 %v1964_v28, %v554_v54  ;;  %vm497_vm5 = vweird.f32 %v1823_v34  ;;  %vm2105_vm4 = vmor %vm557_vm8, %vm558_vm15 }
  0xfc   :  { %v571_v21 = vadd.f32 %v2009_v11, %v570_v44  ;;  %v585_v9 = vmul.f32 %v2041_v12, %v584_v48  ;;  %vm588_vm7 = vweird.f32 %v2041_v12  ;;  %v2096_v59 = vmul.f32 %v550_v26, %v1801_v16  ;;  %vm2114_vm6 = vmor %vm572_vm9, %vm573_vm2 }
  0xfd   :  { %v1438_v27 = vpop.eup %1437  ;;  %vm602_vm3 = vweird.f32 %v2011_v40  ;;  %v608_v32 = vand.u32 2147483648, %v2011_v40  ;;  %v556_v38 = vadd.f32 %v1964_v28, %v555_v47  ;;  %v494_v29 = vsub.f32 1.0, %v1985_v18  ;;  %vm2127_vm8 = vmor %vm587_vm11, %vm588_vm7 }
  0xfe   :  { %v598_v15 = vmul.f32 %v1438_v27, %v2011_v40  ;;  %vm2119_vm10 = vcmp.eq.f32.partialorder %v606_v58, 8.507059e+37  ;;  %v586_v31 = vadd.f32 %v2041_v12, %v585_v9  ;;  %v621_v46 = vand.u32 2147483647, %v2044_v22 }
  0xff   :  { %v1440_v14 = vpop.eup %1439  ;;  %v623_v52 = vand.u32 2147483648, %v2044_v22  ;;  %v655_v61 = vpack.c.bf16 %v2096_v59, %v2031_v23  ;;  %v560_v54 = vsel %vm2105_vm4, %v1964_v28, %v556_v38  ;;  %v2138_v35 = vmul.f32 %v535_v51, %v1774_v63 }
 0x100   :  { %v575_v0 = vsel %vm2114_vm6, %v2009_v11, %v571_v21  ;;  %v599_v39 = vsub.f32 1.0, %v598_v15  ;;  %v590_v50 = vsel %vm2127_vm8, %v2041_v12, %v586_v31  ;;  %v613_v44 = vmul.f32 %v1440_v14, %v2044_v22 }
 0x101   :  { %v2806_v58 = vand.u32 2147483647, %v1823_v34  ;;  %v565_v63 = vsel %vm2065_vm14, %v564_v53, %v560_v54  ;;  %v2156_v28 = vmul.f32 %v490_v37, %v1755_v36  ;;  %v495_v11 = vmul.f32 %v1899_v60, %v494_v29 }
 0x102   :  { %vm498_vm11 = vweird.f32 %v1899_v60  ;;  %v600_v26 = vmul.f32 %v1438_v27, %v599_v39  ;;  %vm603_vm12 = vweird.f32 %v1438_v27  ;;  %v614_v12 = vsub.f32 1.0, %v613_v44 }
 0x103   :  { %vm2149_vm9 = vcmp.eq.f32.partialorder %v2806_v58, 8.507059e+37  ;;  %v2161_v51 = vmul.f32 %v565_v63, %v1804_v17  ;;  %v580_v47 = vsel %vm2072_vm0, %v2026_v3, %v575_v0  ;;  %v595_v8 = vsel %vm2077_vm1, %v594_v49, %v590_v50  ;;  %vm2174_vm15 = vmor %vm497_vm5, %vm498_vm11  ;;  %v2818_v49 = vld [vmem:[#allocation8_spill] sm:$0xff] }
 0x104   :  { %vm617_vm13 = vweird.f32 %v2044_v22  ;;  %v496_v36 = vadd.f32 %v1899_v60, %v495_v11  ;;  %v601_v53 = vadd.f32 %v1438_v27, %v600_v26  ;;  %v615_v37 = vmul.f32 %v1440_v14, %v614_v12  ;;  %vm604_vm0 = vmor %vm602_vm3, %vm603_vm12 }
 0x105   :  { %vm618_vm14 = vweird.f32 %v1440_v14  ;;  %v656_v21 = vpack.c.bf16 %v2161_v51, %v2138_v35  ;;  %v609_v3 = vor.u32 1.1754944e-38, %v608_v32  ;;  %vm2180_vm1 = vcmp.eq.f32.partialorder %v621_v46, 8.507059e+37 }
 0x106   :  { %v624_v62 = vor.u32 1.1754944e-38, %v623_v52  ;;  %v653_v30 = vpack.c.bf16 %v2156_v28, %v1962_v10  ;;  %v605_v9 = vsel %vm604_vm0, %v1438_v27, %v601_v53  ;;  %v616_v38 = vadd.f32 %v1440_v14, %v615_v37  ;;  %vm619_vm2 = vmor %vm617_vm13, %vm618_vm14  ;;  %v1366_v10 = vld [vmem:[%s2757_s5] sm:$0xff]  ;;  %v2817_v28 = vld [vmem:[#allocation7_spill] sm:$0xff] }
 0x107   :  { %v500_v5 = vsel %vm2174_vm15, %v1899_v60, %v496_v36  ;;  %v418_v29 = vmul.f32 %v1829_v42, %v1784_v6  ;;  %v610_v40 = vsel %vm2119_vm10, %v609_v3, %v605_v9  ;;  %v639_v32 = vmul.f32 %v580_v47, %v1838_v1  ;;  %v1369_v9 = vld [vmem:[%s2757_s5 + $0x18] sm:$0xff] }
 0x108   :  { %v640_v16 = vmul.f32 %v595_v8, %v1841_v2  ;;  %v2813_v27 = vand.u32 2147483648, %v1823_v34  ;;  %v641_v31 = vmul.f32 %v610_v40, %v1908_v56  ;;  %v620_v46 = vsel %vm619_vm2, %v1440_v14, %v616_v38  ;;  %v670_v40 = vpop.permute.xlu2 %669 }
 0x109   :  { %v391_v60 = vadd.f32 %v1792_v13, %v1877_v25  ;;  %v419_v18 = vsub.f32 1.0, %v418_v29  ;;  %v625_v45 = vsel %vm2180_vm1, %v624_v62, %v620_v46  ;;  %vm393_vm5 = vweird.f32 %v1792_v13 }
 0x10a   :  { %v504_v15 = vor.u32 1.1754944e-38, %v2813_v27  ;;  %v398_v2 = vand.u32 2147483648, %v1762_v43  ;;  %v657_v22 = vpack.c.bf16 %v641_v31, %v639_v32  ;;  %v642_v34 = vmul.f32 %v625_v45, %v1911_v57  ;;  %v680_v45 = vpop.permute.xlu1 %679 }
 0x10b   :  { %v420_v56 = vmul.f32 %v1829_v42, %v419_v18  ;;  %vm423_vm7 = vweird.f32 %v1829_v42  ;;  %vm392_vm3 = vweird.f32 %v1762_v43  ;;  %v426_v25 = vand.u32 2147483647, %v1784_v6 }
 0x10c   :  { %v505_v1 = vsel %vm2149_vm9, %v504_v15, %v500_v5  ;;  %v428_v14 = vand.u32 2147483648, %v1784_v6  ;;  %v403_v52 = vmul.f32 %v1821_v33, %v1782_v4  ;;  %744 = vmatpush.bf16.msrb.mxu0 %v657_v22  ;;  %v658_v54 = vpack.c.bf16 %v642_v34, %v640_v16  ;;  %vm2216_vm4 = vmor %vm392_vm3, %vm393_vm5  ;;  %v675_v16 = vpop.permute.xlu0 %674 }
 0x10d   :  { %v396_v57 = vand.u32 2147483647, %v1762_v43  ;;  %v421_v0 = vadd.f32 %v1829_v42, %v420_v56  ;;  %vm422_vm6 = vweird.f32 %v1784_v6  ;;  %v634_v39 = vmul.f32 %v505_v1, %v1760_v41 }
 0x10e   :  { %v395_v50 = vsel %vm2216_vm4, %v1792_v13, %v391_v60  ;;  %vm424_vm10 = vmor %vm422_vm6, %vm423_vm7  ;;  %v429_v44 = vor.u32 1.1754944e-38, %v428_v14  ;;  %v404_v58 = vsub.f32 1.0, %v403_v52  ;;  %773 = vmatpush.bf16.msrb.mxu1 %v658_v54  ;;  %v399_v48 = vor.u32 1.1754944e-38, %v398_v2 }
 0x10f   :  { %v425_v63 = vsel %vm424_vm10, %v1829_v42, %v421_v0  ;;  %vm427_vm8 = vcmp.eq.f32.partialorder %v426_v25, 8.507059e+37  ;;  %v433_v43 = vmul.f32 %v1834_v55, %v1788_v7  ;;  %vm408_vm9 = vweird.f32 %v1821_v33 }
 0x110   :  { %v430_v11 = vsel %vm427_vm8, %v429_v44, %v425_v63  ;;  %v405_v6 = vmul.f32 %v1821_v33, %v404_v58  ;;  %v413_v41 = vand.u32 2147483648, %v1782_v4  ;;  %745 = vmatpush.bf16.msrb.mxu0 %v655_v61  ;;  %v632_v13 = vmul.f32 %v1981_v19, %v1742_v20  ;;  %v685_v0 = vpop.permute.xlu2 %684 }
 0x111   :  { %vm397_vm11 = vcmp.eq.f32.partialorder %v396_v57, 8.507059e+37  ;;  %v411_v42 = vand.u32 2147483647, %v1782_v4  ;;  %v434_v26 = vsub.f32 1.0, %v433_v43  ;;  %vm407_vm12 = vweird.f32 %v1782_v4  ;;  %v2816_v4 = vld [vmem:[#allocation6_spill] sm:$0xff] }
 0x112   :  { %v400_v12 = vsel %vm397_vm11, %v399_v48, %v395_v50  ;;  %v406_v51 = vadd.f32 %v1821_v33, %v405_v6  ;;  %v443_v47 = vand.u32 2147483648, %v1788_v7  ;;  %774 = vmatpush.bf16.msrb.mxu1 %v656_v21  ;;  %v629_v8 = vmul.f32 %v430_v11, %v1748_v24  ;;  %vm409_vm13 = vmor %vm407_vm12, %vm408_vm9 }
 0x113   :  { %v435_v23 = vmul.f32 %v1834_v55, %v434_v26  ;;  %vm438_vm14 = vweird.f32 %v1834_v55  ;;  %v441_v20 = vand.u32 2147483647, %v1788_v7  ;;  %v654_v19 = vpack.c.bf16 %v634_v39, %v632_v13 }
 0x114   :  { %v410_v59 = vsel %vm409_vm13, %v1821_v33, %v406_v51  ;;  %v414_v61 = vor.u32 1.1754944e-38, %v413_v41  ;;  %746 = vmatpush.bf16.msrb.mxu0 %v653_v30  ;;  %v627_v36 = vmul.f32 %v400_v12, %v2816_v4  ;;  %vm412_vm15 = vcmp.eq.f32.partialorder %v411_v42, 8.507059e+37  ;;  %v1368_v30 = vld [vmem:[%s2757_s5 + $0x10] sm:$0xff] }
 0x115   :  { %v436_v24 = vadd.f32 %v1834_v55, %v435_v23  ;;  %vm437_vm0 = vweird.f32 %v1788_v7  ;;  %v444_v37 = vor.u32 1.1754944e-38, %v443_v47  ;;  %vm442_vm2 = vcmp.eq.f32.partialorder %v441_v20, 8.507059e+37  ;;  %v690_v47 = vpop.permute.xlu0 %689 }
 0x116   :  { %v415_v53 = vsel %vm412_vm15, %v414_v61, %v410_v59  ;;  %vm439_vm1 = vmor %vm437_vm0, %vm438_vm14  ;;  %775 = vmatpush.bf16.msrb.mxu1 %v654_v19  ;;  %v651_v21 = vpack.c.bf16 %v629_v8, %v627_v36  ;;  %vm727_vm5 = vcmask 523264  }
 0x117   :  { %v440_v17 = vsel %vm439_vm1, %v1834_v55, %v436_v24  ;;  %v628_v3 = vmul.f32 %v415_v53, %v2817_v28  ;;  %v1367_v55 = vld [vmem:[%s2757_s5 + $0x8] sm:$0xff]  ;;  %s1532_s5 = smov [#allocation3]  }
 0x118   :  { %v445_v33 = vsel %vm442_vm2, %v444_v37, %v440_v17  ;;  %747 = vmatpush.bf16.msrb.mxu0 %v651_v21  ;;  %v695_v17 = vpop.permute.xlu1 %694  ;;  %s1233_s15 = sshll.u32 %s1532_s5, 4  ;;  %s1234_s15 = int_to_ptr.vmem [resolvable:$true] %s1233_s15 }
 0x119   :  { %v630_v62 = vmul.f32 %v445_v33, %v2818_v49 }
 0x11b   :  { %v652_v7 = vpack.c.bf16 %v630_v62, %v628_v3  ;;  %1332 = vmatmul.msk.bf16.vlgmr.msrb.gmra.mxu0 %vm727_vm5, %v1366_v10 }
 0x11d   :  { %776 = vmatpush.bf16.msrb.mxu1 %v652_v7 }
 0x120   :  { %1336 = vmatmul.msk.bf16.vlgmr.msrb.gmra.mxu1 %vm727_vm5, %v1366_v10 }
 0x12b   :  { %1333 = vmatmul.msk.bf16.gmra.mxu0 %vm727_vm5, %v1367_v55 }
 0x130   :  { %1337 = vmatmul.msk.bf16.gmra.mxu1 %vm727_vm5, %v1367_v55 }
 0x13b   :  { %1334 = vmatmul.msk.bf16.gmra.mxu0 %vm727_vm5, %v1368_v30 }
 0x140   :  { %1338 = vmatmul.msk.bf16.gmra.mxu1 %vm727_vm5, %v1368_v30 }
 0x14b   :  { %1335 = vmatmul.msk.bf16.gmra.mxu0 %vm727_vm5, %v1369_v9 }
 0x150   :  { %1339 = vmatmul.msk.bf16.gmra.mxu1 %vm727_vm5, %v1369_v9 }
 0x198   :  { %v749_v38 = vpop.f32.mrf.mxu0 }
 0x199   :  { %v2268_v32 = vadd.f32 %v749_v38, %v670_v40 }
 0x19b   :  { %v1340_v27 = vmul.f32 -1.442695, %v2268_v32 }
 0x19d   :  { %v778_v5 = vpop.f32.mrf.mxu1  ;;  %1441 = vpow2.f32 %v1340_v27 }
 0x19e   :  { %v2273_v60 = vadd.f32 %v778_v5, %v670_v40 }
 0x1a0   :  { %v751_v29 = vpop.f32.mrf.mxu0  ;;  %v1341_v2 = vmul.f32 -1.442695, %v2273_v60 }
 0x1a1   :  { %v2271_v15 = vadd.f32 %v751_v29, %v675_v16 }
 0x1a3   :  { %v1342_v18 = vmul.f32 -1.442695, %v2271_v15  ;;  %v1442_v22 = vpop.eup %1441 }
 0x1a4   :  { %v2282_v52 = vadd.f32 1.0, %v1442_v22 }
 0x1a5   :  { %v780_v31 = vpop.f32.mrf.mxu1  ;;  %1443 = vpow2.f32 %v1342_v18 }
 0x1a6   :  { %v2280_v25 = vadd.f32 %v780_v31, %v675_v16  ;;  %1445 = vpow2.f32 %v1341_v2  ;;  %v871_v28 = vand.u32 2147483647, %v2282_v52  ;;  %v873_v55 = vand.u32 2147483648, %v2282_v52  ;;  %v2345_v16 = vpop.permute.xlu2 %699 }
 0x1a7   :  { %vm867_vm7 = vweird.f32 %v2282_v52 }
 0x1a8   :  { %v754_v46 = vpop.f32.mrf.mxu0  ;;  %v1343_v57 = vmul.f32 -1.442695, %v2280_v25  ;;  %vm2347_vm4 = vcmp.eq.f32.partialorder %v871_v28, 8.507059e+37  ;;  %v874_v18 = vor.u32 1.1754944e-38, %v873_v55 }
 0x1a9   :  { %v2276_v1 = vadd.f32 %v754_v46, %v680_v45 }
 0x1ab   :  { %v1344_v34 = vmul.f32 -1.442695, %v2276_v1  ;;  %v1444_v54 = vpop.eup %1443 }
 0x1ac   :  { %v2288_v39 = vadd.f32 1.0, %v1444_v54  ;;  %v1446_v50 = vpop.eup %1445 }
 0x1ad   :  { %v783_v56 = vpop.f32.mrf.mxu1  ;;  %1447 = vpow2.f32 %v1344_v34  ;;  %v2293_v43 = vadd.f32 1.0, %v1446_v50 }
 0x1ae   :  { %v2284_v35 = vadd.f32 %v783_v56, %v680_v45  ;;  %1449 = vrcp.f32 %v2282_v52  ;;  %v901_v45 = vand.u32 2147483647, %v2288_v39  ;;  %vm897_vm8 = vweird.f32 %v2288_v39 }
 0x1af   :  { %1451 = vpow2.f32 %v1343_v57  ;;  %v888_v29 = vand.u32 2147483648, %v2293_v43  ;;  %vm882_vm10 = vweird.f32 %v2293_v43  ;;  %v886_v54 = vand.u32 2147483647, %v2293_v43 }
 0x1b0   :  { %v756_v14 = vpop.f32.mrf.mxu0  ;;  %v1345_v44 = vmul.f32 -1.442695, %v2284_v35  ;;  %1453 = vrcp.f32 %v2288_v39  ;;  %v903_v57 = vand.u32 2147483648, %v2288_v39  ;;  %vm2382_vm11 = vcmp.eq.f32.partialorder %v901_v45, 8.507059e+37 }
 0x1b1   :  { %v2291_v58 = vadd.f32 %v756_v14, %v685_v0  ;;  %vm2393_vm13 = vcmp.eq.f32.partialorder %v886_v54, 8.507059e+37 }
 0x1b2   :  { %1455 = vpow2.f32 %v1345_v44 }
 0x1b3   :  { %v1448_v48 = vpop.eup %1447  ;;  %v1346_v11 = vmul.f32 -1.442695, %v2291_v58  ;;  %1457 = vrcp.f32 %v2293_v43 }
 0x1b4   :  { %v2297_v41 = vpop.eup %1449  ;;  %v2299_v13 = vadd.f32 1.0, %v1448_v48  ;;  %v889_v48 = vor.u32 1.1754944e-38, %v888_v29 }
 0x1b5   :  { %v785_v63 = vpop.f32.mrf.mxu1  ;;  %v1452_v42 = vpop.eup %1451  ;;  %v863_v26 = vmul.f32 %v2297_v41, %v2282_v52  ;;  %1459 = vpow2.f32 %v1346_v11  ;;  %vm868_vm3 = vweird.f32 %v2297_v41 }
 0x1b6   :  { %v2304_v12 = vpop.eup %1453  ;;  %1461 = vrcp.f32 %v2299_v13  ;;  %v2307_v8 = vadd.f32 1.0, %v1452_v42  ;;  %v2309_v23 = vadd.f32 %v785_v63, %v685_v0  ;;  %vm2360_vm6 = vmor %vm867_vm7, %vm868_vm3  ;;  %vm927_vm2 = vweird.f32 %v2299_v13 }
 0x1b7   :  { %v864_v19 = vsub.f32 1.0, %v863_v26  ;;  %v893_v4 = vmul.f32 %v2304_v12, %v2288_v39  ;;  %vm898_vm9 = vweird.f32 %v2304_v12 }
 0x1b8   :  { %v759_v6 = vpop.f32.mrf.mxu0  ;;  %v1456_v51 = vpop.eup %1455  ;;  %1463 = vrcp.f32 %v2307_v8  ;;  %v1347_v53 = vmul.f32 -1.442695, %v2309_v23  ;;  %vm2403_vm14 = vmor %vm897_vm8, %vm898_vm9  ;;  %v916_v28 = vand.u32 2147483647, %v2307_v8  ;;  %vm912_vm15 = vweird.f32 %v2307_v8 }
 0x1b9   :  { %v2311_v20 = vadd.f32 %v759_v6, %v690_v47  ;;  %v2313_v61 = vpop.eup %1457  ;;  %v2317_v36 = vadd.f32 1.0, %v1456_v51  ;;  %v865_v10 = vmul.f32 %v2297_v41, %v864_v19  ;;  %v894_v62 = vsub.f32 1.0, %v893_v4  ;;  %v2471_v51 = vpop.permute.xlu1 %1128 }
 0x1ba   :  { %v878_v49 = vmul.f32 %v2313_v61, %v2293_v43  ;;  %vm883_vm12 = vweird.f32 %v2313_v61  ;;  %vm2444_vm7 = vcmp.eq.f32.partialorder %v916_v28, 8.507059e+37  ;;  %v2497_v28 = vpop.permute.xlu2 %1133 }
 0x1bb   :  { %v1460_v24 = vpop.eup %1459  ;;  %v1348_v33 = vmul.f32 -1.442695, %v2311_v20  ;;  %1465 = vrcp.f32 %v2317_v36  ;;  %v866_v5 = vadd.f32 %v2297_v41, %v865_v10  ;;  %v895_v46 = vmul.f32 %v2304_v12, %v894_v62  ;;  %vm2429_vm1 = vmor %vm882_vm10, %vm883_vm12 }
 0x1bc   :  { %v2321_v21 = vpop.eup %1461  ;;  %v2331_v7 = vadd.f32 1.0, %v1460_v24  ;;  %1467 = vpow2.f32 %v1347_v53  ;;  %v879_v31 = vsub.f32 1.0, %v878_v49  ;;  %v904_v24 = vor.u32 1.1754944e-38, %v903_v57 }
 0x1bd   :  { %v788_v59 = vpop.f32.mrf.mxu1  ;;  %v923_v30 = vmul.f32 %v2321_v21, %v2299_v13  ;;  %1469 = vpow2.f32 %v1348_v33  ;;  %v870_v52 = vsel %vm2360_vm6, %v2297_v41, %v866_v5  ;;  %v896_v42 = vadd.f32 %v2304_v12, %v895_v46 }
 0x1be   :  { %v2338_v38 = vpop.eup %1463  ;;  %v2343_v40 = vadd.f32 %v788_v59, %v690_v47  ;;  %1471 = vrcp.f32 %v2331_v7  ;;  %v880_v6 = vmul.f32 %v2313_v61, %v879_v31  ;;  %v875_v33 = vsel %vm2347_vm4, %v874_v18, %v870_v52 }
 0x1bf   :  { %v924_v2 = vsub.f32 1.0, %v923_v30  ;;  %v908_v0 = vmul.f32 %v2338_v38, %v2307_v8  ;;  %v900_v55 = vsel %vm2403_vm14, %v2304_v12, %v896_v42  ;;  %v933_v30 = vand.u32 2147483648, %v2299_v13 }
 0x1c0   :  { %v761_v37 = vpop.f32.mrf.mxu0  ;;  %v1349_v63 = vmul.f32 -1.442695, %v2343_v40  ;;  %v881_v62 = vadd.f32 %v2313_v61, %v880_v6  ;;  %vm928_vm0 = vweird.f32 %v2321_v21  ;;  %v918_v46 = vand.u32 2147483648, %v2307_v8 }
 0x1c1   :  { %v2326_v3 = vadd.f32 %v761_v37, %v695_v17  ;;  %v2354_v56 = vpop.eup %1465  ;;  %v925_v41 = vmul.f32 %v2321_v21, %v924_v2  ;;  %v909_v53 = vsub.f32 1.0, %v908_v0  ;;  %v931_v18 = vand.u32 2147483647, %v2299_v13  ;;  %v2437_v2 = vpop.permute.xlu0 %704  ;;  %vm2450_vm3 = vmor %vm927_vm2, %vm928_vm0 }
 0x1c2   :  { %v1468_v44 = vpop.eup %1467  ;;  %v938_v47 = vmul.f32 %v2354_v56, %v2317_v36  ;;  %v885_v43 = vsel %vm2429_vm1, %v2313_v61, %v881_v62  ;;  %vm913_vm5 = vweird.f32 %v2338_v38  ;;  %v934_v54 = vor.u32 1.1754944e-38, %v933_v30 }
 0x1c3   :  { %v1350_v9 = vmul.f32 -1.442695, %v2326_v3  ;;  %v1470_v11 = vpop.eup %1469  ;;  %v2397_v37 = vadd.f32 1.0, %v1468_v44  ;;  %v910_v29 = vmul.f32 %v2338_v38, %v909_v53  ;;  %vm932_vm4 = vcmp.eq.f32.partialorder %v931_v18, 8.507059e+37  ;;  %vm2485_vm6 = vmor %vm912_vm15, %vm913_vm5 }
 0x1c4   :  { %v2390_v59 = vpop.eup %1471  ;;  %v2408_v49 = vadd.f32 1.0, %v1470_v11  ;;  %v939_v5 = vsub.f32 1.0, %v938_v47  ;;  %v890_v11 = vsel %vm2393_vm13, %v889_v48, %v885_v43  ;;  %v946_v6 = vand.u32 2147483647, %v2317_v36 }
 0x1c5   :  { %1473 = vpow2.f32 %v1350_v9  ;;  %v790_v22 = vpop.f32.mrf.mxu1  ;;  %v926_v9 = vadd.f32 %v2321_v21, %v925_v41  ;;  %v953_v27 = vmul.f32 %v2390_v59, %v2331_v7  ;;  %v911_v0 = vadd.f32 %v2338_v38, %v910_v29 }
 0x1c6   :  { %v2380_v26 = vadd.f32 %v790_v22, %v695_v17  ;;  %1475 = vpow2.f32 %v1349_v63  ;;  %v1102_v22 = vmul.f32 %v875_v33, %v2268_v32  ;;  %v905_v32 = vsel %vm2382_vm11, %v904_v24, %v900_v55 }
 0x1c7   :  { %v930_v61 = vsel %vm2450_vm3, %v2321_v21, %v926_v9  ;;  %v940_v57 = vmul.f32 %v2354_v56, %v939_v5  ;;  %v954_v44 = vsub.f32 1.0, %v953_v27  ;;  %v948_v21 = vand.u32 2147483648, %v2317_v36 }
 0x1c8   :  { %v764_v34 = vpop.f32.mrf.mxu0  ;;  %v1351_v39 = vmul.f32 -1.442695, %v2380_v26  ;;  %v1104_v41 = vmul.f32 %v905_v32, %v2271_v15  ;;  %v935_v47 = vsel %vm932_vm4, %v934_v54, %v930_v61  ;;  %v1166_v48 = vmul.f32 %v2471_v51, %v1102_v22 }
 0x1c9   :  { %v2370_v50 = vadd.f32 %v764_v34, %v2345_v16  ;;  %v919_v53 = vor.u32 1.1754944e-38, %v918_v46  ;;  %v941_v15 = vadd.f32 %v2354_v56, %v940_v57  ;;  %vm943_vm10 = vweird.f32 %v2354_v56  ;;  %v2527_v46 = vpop.permute.xlu0 %1138 }
 0x1ca   :  { %v915_v33 = vsel %vm2485_vm6, %v2338_v38, %v911_v0  ;;  %v955_v10 = vmul.f32 %v2390_v59, %v954_v44  ;;  %v2500_v62 = vmul.f32 %v890_v11, %v2273_v60  ;;  %v1106_v55 = vmul.f32 %v935_v47, %v2276_v1 }
 0x1cb   :  { %v1352_v19 = vmul.f32 -1.442695, %v2370_v50  ;;  %v1474_v17 = vpop.eup %1473  ;;  %vm942_vm8 = vweird.f32 %v2317_v36  ;;  %vm2504_vm9 = vcmp.eq.f32.partialorder %v946_v6, 8.507059e+37  ;;  %v949_v5 = vor.u32 1.1754944e-38, %v948_v21 }
 0x1cc   :  { %v2423_v12 = vadd.f32 1.0, %v1474_v17  ;;  %v1476_v14 = vpop.eup %1475  ;;  %vm2511_vm11 = vmor %vm942_vm8, %vm943_vm10  ;;  %v920_v36 = vsel %vm2444_vm7, %v919_v53, %v915_v33  ;;  %v956_v18 = vadd.f32 %v2390_v59, %v955_v10  ;;  %vm958_vm12 = vweird.f32 %v2390_v59 }
 0x1cd   :  { %1477 = vpow2.f32 %v1352_v19  ;;  %v793_v45 = vpop.f32.mrf.mxu1  ;;  %v2474_v19 = vadd.f32 1.0, %v1476_v14  ;;  %v945_v29 = vsel %vm2511_vm11, %v2354_v56, %v941_v15  ;;  %v1170_v22 = vmul.f32 %v2527_v46, %v1106_v55 }
 0x1ce   :  { %1479 = vrcp.f32 %v2397_v37  ;;  %v2463_v52 = vadd.f32 %v793_v45, %v2345_v16  ;;  %v961_v43 = vand.u32 2147483647, %v2331_v7  ;;  %v963_v56 = vand.u32 2147483648, %v2331_v7 }
 0x1cf   :  { %1481 = vrcp.f32 %v2408_v49  ;;  %vm957_vm13 = vweird.f32 %v2331_v7  ;;  %v2544_v54 = vmul.f32 %v920_v36, %v2280_v25  ;;  %v950_v57 = vsel %vm2504_vm9, %v949_v5, %v945_v29 }
 0x1d0   :  { %1483 = vpow2.f32 %v1351_v39  ;;  %v1353_v8 = vmul.f32 -1.442695, %v2463_v52  ;;  %v1168_v39 = vmul.f32 %v2497_v28, %v1104_v41  ;;  %v766_v1 = vpop.f32.mrf.mxu0  ;;  %vm2548_vm14 = vmor %vm957_vm13, %vm958_vm12  ;;  %v978_v11 = vand.u32 2147483648, %v2397_v37 }
 0x1d1   :  { %1485 = vrcp.f32 %v2423_v12  ;;  %v2532_v45 = vadd.f32 %v766_v1, %v2437_v2  ;;  %v960_v7 = vsel %vm2548_vm14, %v2390_v59, %v956_v18  ;;  %vm962_vm15 = vcmp.eq.f32.partialorder %v961_v43, 8.507059e+37 }
 0x1d2   :  { %v1182_v14 = vadd.f32 %v1168_v39, %v1166_v48  ;;  %v964_v21 = vor.u32 1.1754944e-38, %v963_v56  ;;  %v2564_v48 = vmul.f32 %v950_v57, %v2284_v35  ;;  %vm972_vm0 = vweird.f32 %v2397_v37 }
 0x1d3   :  { %v1478_v63 = vpop.eup %1477  ;;  %v1354_v61 = vmul.f32 -1.442695, %v2532_v45  ;;  %v991_v59 = vand.u32 2147483647, %v2408_v49  ;;  %v976_v10 = vand.u32 2147483647, %v2397_v37  ;;  %vm987_vm2 = vweird.f32 %v2408_v49 }
 0x1d4   :  { %v2469_v42 = vpop.eup %1479  ;;  %v2476_v16 = vadd.f32 1.0, %v1478_v63  ;;  %v2561_v6 = vadd.f32 %v1182_v14, %v1170_v22  ;;  %v965_v53 = vsel %vm962_vm15, %v964_v21, %v960_v7  ;;  %v993_v35 = vand.u32 2147483648, %v2408_v49 }
 0x1d5   :  { %v2478_v24 = vpop.eup %1481  ;;  %v968_v60 = vmul.f32 %v2469_v42, %v2397_v37  ;;  %vm973_vm1 = vweird.f32 %v2469_v42  ;;  %v1108_v5 = vmul.f32 %v965_v53, %v2291_v58  ;;  %vm2586_vm5 = vcmp.eq.f32.partialorder %v991_v59, 8.507059e+37  ;;  %v795_v14 = vpop.f32.mrf.mxu1 }
 0x1d6   :  { %v1484_v17 = vpop.eup %1483  ;;  %1487 = vrcp.f32 %v2476_v16  ;;  %v983_v27 = vmul.f32 %v2478_v24, %v2408_v49  ;;  %v1008_v36 = vand.u32 2147483648, %v2474_v19  ;;  %vm988_vm7 = vweird.f32 %v2478_v24  ;;  %vm2608_vm4 = vmor %vm972_vm0, %vm973_vm1 }
 0x1d7   :  { %v2508_v38 = vpop.eup %1485  ;;  %1489 = vrcp.f32 %v2474_v19  ;;  %v2525_v31 = vadd.f32 1.0, %v1484_v17  ;;  %v969_v32 = vsub.f32 1.0, %v968_v60  ;;  %vm2595_vm3 = vcmp.eq.f32.partialorder %v976_v10, 8.507059e+37  ;;  %vm2623_vm8 = vmor %vm987_vm2, %vm988_vm7 }
 0x1d8   :  { %1491 = vpow2.f32 %v1353_v8  ;;  %v1013_v34 = vmul.f32 %v2508_v38, %v2423_v12  ;;  %v984_v44 = vsub.f32 1.0, %v983_v27  ;;  %v2575_v8 = vor.u32 1.1754944e-38, %v978_v11 }
 0x1d9   :  { %1493 = vrcp.f32 %v2525_v31  ;;  %v970_v4 = vmul.f32 %v2469_v42, %v969_v32  ;;  %v994_v58 = vor.u32 1.1754944e-38, %v993_v35  ;;  %v1006_v43 = vand.u32 2147483647, %v2474_v19  ;;  %v2602_v32 = vpop.permute.xlu1 %1143 }
 0x1da   :  { %1495 = vpow2.f32 %v1354_v61  ;;  %v1014_v41 = vsub.f32 1.0, %v1013_v34  ;;  %v985_v15 = vmul.f32 %v2478_v24, %v984_v44  ;;  %v1023_v56 = vand.u32 2147483648, %v2423_v12 }
 0x1db   :  { %v971_v60 = vadd.f32 %v2469_v42, %v970_v4  ;;  %vm1002_vm6 = vweird.f32 %v2474_v19  ;;  %vm1018_vm10 = vweird.f32 %v2508_v38  ;;  %v1172_v44 = vmul.f32 %v2602_v32, %v1108_v5 }
 0x1dc   :  { %v2539_v13 = vpop.eup %1487  ;;  %v1015_v39 = vmul.f32 %v2508_v38, %v1014_v41  ;;  %v986_v29 = vadd.f32 %v2478_v24, %v985_v15  ;;  %v1009_v7 = vor.u32 1.1754944e-38, %v1008_v36  ;;  %vm1017_vm9 = vweird.f32 %v2423_v12 }
 0x1dd   :  { %v2553_v63 = vpop.eup %1489  ;;  %v1043_v25 = vmul.f32 %v2539_v13, %v2476_v16  ;;  %v2629_v11 = vadd.f32 %v795_v14, %v2437_v2  ;;  %v975_v21 = vsel %vm2608_vm4, %v2469_v42, %v971_v60  ;;  %vm2641_vm11 = vmor %vm1017_vm9, %vm1018_vm10  ;;  %vm1048_vm12 = vweird.f32 %v2539_v13 }
 0x1de   :  { %v1492_v47 = vpop.eup %1491  ;;  %v998_v17 = vmul.f32 %v2553_v63, %v2474_v19  ;;  %v1016_v57 = vadd.f32 %v2508_v38, %v1015_v39  ;;  %v990_v49 = vsel %vm2623_vm8, %v2478_v24, %v986_v29  ;;  %v1024_v53 = vor.u32 1.1754944e-38, %v1023_v56 }
 0x1df   :  { %v2572_v33 = vadd.f32 1.0, %v1492_v47  ;;  %v1044_v55 = vsub.f32 1.0, %v1043_v25  ;;  %v2578_v30 = vpop.eup %1493  ;;  %v1021_v47 = vand.u32 2147483647, %v2423_v12  ;;  %v1355_v42 = vmul.f32 -1.442695, %v2629_v11 }
 0x1e0   :  { %v1496_v9 = vpop.eup %1495  ;;  %v999_v27 = vsub.f32 1.0, %v998_v17  ;;  %v1028_v0 = vmul.f32 %v2578_v30, %v2525_v31  ;;  %v1020_v24 = vsel %vm2641_vm11, %v2508_v38, %v1016_v57  ;;  %v1053_v12 = vand.u32 2147483648, %v2476_v16 }
 0x1e1   :  { %1497 = vrcp.f32 %v2572_v33  ;;  %v2593_v18 = vadd.f32 1.0, %v1496_v9  ;;  %v1045_v34 = vmul.f32 %v2539_v13, %v1044_v55  ;;  %v995_v17 = vsel %vm2586_vm5, %v994_v58, %v990_v49 }
 0x1e2   :  { %v1000_v41 = vmul.f32 %v2553_v63, %v999_v27  ;;  %v1029_v15 = vsub.f32 1.0, %v1028_v0  ;;  %vm2656_vm13 = vcmp.eq.f32.partialorder %v1006_v43, 8.507059e+37  ;;  %vm1047_vm14 = vweird.f32 %v2476_v16 }
 0x1e3   :  { %1499 = vrcp.f32 %v2593_v18  ;;  %v1046_v2 = vadd.f32 %v2539_v13, %v1045_v34  ;;  %v1051_v35 = vand.u32 2147483647, %v2476_v16  ;;  %v1184_v39 = vadd.f32 %v2561_v6, %v1172_v44  ;;  %vm2667_vm1 = vmor %vm1047_vm14, %vm1048_vm12  ;;  %v2675_v6 = vpop.permute.xlu2 %1148 }
 0x1e4   :  { %1501 = vpow2.f32 %v1355_v42  ;;  %v1001_v38 = vadd.f32 %v2553_v63, %v1000_v41  ;;  %vm1003_vm15 = vweird.f32 %v2553_v63  ;;  %vm1022_vm0 = vcmp.eq.f32.partialorder %v1021_v47, 8.507059e+37 }
 0x1e5   :  { %v1025_v5 = vsel %vm1022_vm0, %v1024_v53, %v1020_v24  ;;  %v1050_v16 = vsel %vm2667_vm1, %v2539_v13, %v1046_v2  ;;  %v980_v36 = vsel %vm2595_vm3, %v2575_v8, %v975_v21  ;;  %v1110_v29 = vmul.f32 %v995_v17, %v2311_v20  ;;  %vm2684_vm2 = vmor %vm1002_vm6, %vm1003_vm15 }
 0x1e6   :  { %v1030_v27 = vmul.f32 %v2578_v30, %v1029_v15  ;;  %v1054_v58 = vor.u32 1.1754944e-38, %v1053_v12  ;;  %vm1032_vm5 = vweird.f32 %v2525_v31  ;;  %v1036_v13 = vand.u32 2147483647, %v2525_v31 }
 0x1e7   :  { %v2631_v25 = vpop.eup %1497  ;;  %vm1052_vm7 = vcmp.eq.f32.partialorder %v1051_v35, 8.507059e+37  ;;  %v1005_v8 = vsel %vm2684_vm2, %v2553_v63, %v1001_v38  ;;  %v1112_v20 = vmul.f32 %v1025_v5, %v2326_v3  ;;  %v1083_v34 = vand.u32 2147483648, %v2593_v18  ;;  %v1154_v63 = vpop.permute.xlu0 %1153 }
 0x1e8   :  { %v1058_v59 = vmul.f32 %v2631_v25, %v2572_v33  ;;  %v1055_v22 = vsel %vm1052_vm7, %v1054_v58, %v1050_v16  ;;  %v1081_v57 = vand.u32 2147483647, %v2593_v18  ;;  %v1174_v0 = vmul.f32 %v2675_v6, %v1110_v29 }
 0x1e9   :  { %v1500_v55 = vpop.eup %1499  ;;  %v1031_v44 = vadd.f32 %v2578_v30, %v1030_v27  ;;  %vm1033_vm4 = vweird.f32 %v2578_v30  ;;  %v1038_v3 = vand.u32 2147483648, %v2525_v31  ;;  %v1114_v21 = vmul.f32 %v1055_v22, %v2370_v50 }
 0x1ea   :  { %v1059_v60 = vsub.f32 1.0, %v1058_v59  ;;  %v1073_v1 = vmul.f32 %v1500_v55, %v2593_v18  ;;  %v1502_v19 = vpop.eup %1501  ;;  %vm1078_vm3 = vweird.f32 %v1500_v55  ;;  %vm1077_vm6 = vweird.f32 %v2593_v18  ;;  %vm2710_vm8 = vmor %vm1032_vm5, %vm1033_vm4  ;;  %v1159_v18 = vpop.permute.xlu1 %1158 }
 0x1eb   :  { %v2700_v37 = vadd.f32 1.0, %v1502_v19  ;;  %v1010_v41 = vsel %vm2656_vm13, %v1009_v7, %v1005_v8  ;;  %v1176_v47 = vmul.f32 %v1154_v63, %v1112_v20  ;;  %vm1079_vm10 = vmor %vm1077_vm6, %vm1078_vm3  ;;  %v1084_v4 = vor.u32 1.1754944e-38, %v1083_v34  ;;  %v1164_v17 = vpop.permute.xlu2 %1163 }
 0x1ec   :  { %v1074_v56 = vsub.f32 1.0, %v1073_v1  ;;  %v1060_v14 = vmul.f32 %v2631_v25, %v1059_v60  ;;  %vm1063_vm9 = vweird.f32 %v2631_v25  ;;  %vm1082_vm11 = vcmp.eq.f32.partialorder %v1081_v57, 8.507059e+37 }
 0x1ed   :  { %1503 = vrcp.f32 %v2700_v37  ;;  %v1185_v42 = vadd.f32 %v1184_v39, %v1174_v0  ;;  %v1035_v7 = vsel %vm2710_vm8, %v2578_v30, %v1031_v44  ;;  %v1068_v24 = vand.u32 2147483648, %v2572_v33 }
 0x1ee   :  { %v1075_v61 = vmul.f32 %v1500_v55, %v1074_v56  ;;  %v1061_v59 = vadd.f32 %v2631_v25, %v1060_v14  ;;  %v1178_v31 = vmul.f32 %v1159_v18, %v1114_v21  ;;  %vm1062_vm12 = vweird.f32 %v2572_v33 }
 0x1ef   :  { %v1066_v15 = vand.u32 2147483647, %v2572_v33  ;;  %v1167_v10 = vmul.f32 %v2471_v51, %v2500_v62  ;;  %v1169_v35 = vmul.f32 %v2497_v28, %v2544_v54  ;;  %v1039_v30 = vor.u32 1.1754944e-38, %v1038_v3  ;;  %vm2730_vm13 = vmor %vm1062_vm12, %vm1063_vm9 }
 0x1f0   :  { %v1076_v49 = vadd.f32 %v1500_v55, %v1075_v61  ;;  %v1186_v38 = vadd.f32 %v1185_v42, %v1176_v47  ;;  %vm1037_vm14 = vcmp.eq.f32.partialorder %v1036_v13, 8.507059e+37  ;;  %v1171_v28 = vmul.f32 %v2527_v46, %v2564_v48  ;;  %v1212_v47 = vpop.permute.xlu0 %1211 }
 0x1f1   :  { %v1040_v62 = vsel %vm1037_vm14, %v1039_v30, %v1035_v7  ;;  %v1069_v54 = vor.u32 1.1754944e-38, %v1068_v24  ;;  %vm1067_vm15 = vcmp.eq.f32.partialorder %v1066_v15, 8.507059e+37  ;;  %v1195_v16 = vadd.f32 %v1169_v35, %v1167_v10 }
 0x1f2   :  { %v1080_v50 = vsel %vm1079_vm10, %v1500_v55, %v1076_v49  ;;  %v1109_v55 = vmul.f32 %v980_v36, %v2309_v23  ;;  %v1111_v23 = vmul.f32 %v1010_v41, %v2343_v40  ;;  %v1187_v9 = vadd.f32 %v1186_v38, %v1178_v31 }
 0x1f3   :  { %v1085_v53 = vsel %vm1082_vm11, %v1084_v4, %v1080_v50  ;;  %v1504_v51 = vpop.eup %1503  ;;  %v1113_v36 = vmul.f32 %v1040_v62, %v2380_v26  ;;  %v1196_v27 = vadd.f32 %v1195_v16, %v1171_v28  ;;  %v1098_v46 = vand.u32 2147483648, %v2700_v37 }
 0x1f4   :  { %v1116_v12 = vmul.f32 %v1085_v53, %v2532_v45  ;;  %v1065_v45 = vsel %vm2730_vm13, %v2631_v25, %v1061_v59  ;;  %v1088_v5 = vmul.f32 %v1504_v51, %v2700_v37  ;;  %v1173_v60 = vmul.f32 %v2602_v32, %v1109_v55 }
 0x1f5   :  { %v1070_v1 = vsel %vm1067_vm15, %v1069_v54, %v1065_v45  ;;  %v1175_v58 = vmul.f32 %v2675_v6, %v1111_v23  ;;  %vm1093_vm0 = vweird.f32 %v1504_v51  ;;  %v1096_v43 = vand.u32 2147483647, %v2700_v37 }
 0x1f6   :  { %v1180_v33 = vmul.f32 %v1164_v17, %v1116_v12  ;;  %v1089_v29 = vsub.f32 1.0, %v1088_v5  ;;  %v1115_v40 = vmul.f32 %v1070_v1, %v2463_v52  ;;  %v1197_v13 = vadd.f32 %v1196_v27, %v1173_v60 }
 0x1f7   :  { %v1177_v56 = vmul.f32 %v1154_v63, %v1113_v36  ;;  %vm1092_vm1 = vweird.f32 %v2700_v37  ;;  %v1099_v26 = vor.u32 1.1754944e-38, %v1098_v46  ;;  %vm1097_vm5 = vcmp.eq.f32.partialorder %v1096_v43, 8.507059e+37 }
 0x1f8   :  { %v1188_v25 = vadd.f32 %v1187_v9, %v1180_v33  ;;  %v1090_v48 = vmul.f32 %v1504_v51, %v1089_v29  ;;  %vm1094_vm2 = vmor %vm1092_vm1, %vm1093_vm0  ;;  %v1198_v20 = vadd.f32 %v1197_v13, %v1175_v58  ;;  %v1179_v22 = vmul.f32 %v1159_v18, %v1115_v40 }
 0x1f9   :  { %v1214_v2 = vperm.slane %v1212_v47, 0  ;;  %v1223_v18 = vlaneseq  ;;  %vm1220_vm7 = vcmask 1040384  }
 0x1fa   :  { %v1189_v8 = vrot.slane %v1188_v25, 4  ;;  %v1091_v32 = vadd.f32 %v1504_v51, %v1090_v48  ;;  %v1199_v19 = vadd.f32 %v1198_v20, %v1177_v56 }
 0x1fb   :  { %vm1225_vm3 = vcmp.lt.s32.totalorder %v1223_v18, 256 }
 0x1fc   :  { %v1095_v34 = vsel %vm1094_vm2, %v1504_v51, %v1091_v32  ;;  %v1190_v14 = vadd.f32 %v1189_v8, %v1188_v25  ;;  %v1200_v61 = vadd.f32 %v1199_v19, %v1179_v22 }
 0x1fd   :  { %v1100_v6 = vsel %vm1097_vm5, %v1099_v26, %v1095_v34 }
 0x1fe   :  { %v1117_v52 = vmul.f32 %v1100_v6, %v2629_v11  ;;  %v1191_v0 = vrot.slane %v1190_v14, 2 }
 0x200   :  { %v1181_v57 = vmul.f32 %v1164_v17, %v1117_v52  ;;  %v1192_v3 = vadd.f32 %v1191_v0, %v1190_v14 }
 0x202   :  { %v1201_v44 = vadd.f32 %v1200_v61, %v1181_v57  ;;  %v1193_v37 = vrot.slane %v1192_v3, 1 }
 0x204   :  { %v1202_v63 = vrot.slane %v1201_v44, 4  ;;  %v1194_v59 = vadd.f32 %v1193_v37, %v1192_v3 }
 0x206   :  { %v1203_v21 = vadd.f32 %v1202_v63, %v1201_v44  ;;  %v1215_v11 = vadd.f32 %v1214_v2, %v1194_v59 }
 0x208   :  { %v1204_v49 = vrot.slane %v1203_v21, 2 }
 0x20a   :  { %v1205_v41 = vadd.f32 %v1204_v49, %v1203_v21 }
 0x20c   :  { %v1206_v4 = vrot.slane %v1205_v41, 1 }
 0x20e   :  { %v1207_v50 = vadd.f32 %v1206_v4, %v1205_v41 }
 0x210   :  { %v1216_v42 = vadd.f32 %v1214_v2, %v1207_v50 }
 0x212   :  { %v1219_v7 = vrot.slane %v1216_v42, 7 }
 0x214   :  { %v1221_v24 = vsel %vm1220_vm7, %v1215_v11, %v1219_v7 }
 0x215   :  { %1227 = vst.msk [vmem:[#allocation3] sm:$0x3] %vm1225_vm3, %v1221_v24 }
 0x216   :  { %1238 = dma.vmem_to_hbm [thread:$0]  %s1234_s15, 32, %s1236_s18, [#allocation4]  }
 0x217   :  { %1529 = dma.done.wait [#allocation4], 32  }
 0x218   :  { %1530 = vsyncadd [#allocation4], 4294967264 }
 0x219   :  { %1243 = vsyncpa [#allocation4], 1 }

</bundles_post_ra>
